<compile_context>
chip_gen: v6e
topology: v6e:2x2x1
jax: 0.10.0
libtpu: 0.0.40
codegen_flags: <defaults>
</compile_context>

<pallas_src>
import math
import functools

import numpy as np
import jax
import jax.numpy as jnp
from jax.experimental import pallas as pl
from jax.experimental.pallas import tpu as pltpu


def _round_up(x, m):
    return ((x + m - 1) // m) * m


# ----------------------------------------------------------------------------
# Fused multi-layer kernel for one batch tile (batch on lanes).
#   p_ref   : (K, TB)
#   thr/thi : (LMl, TB)
#   txr/txi : (LMl, K, TB)    rows = reflecting element l, cols = user j
#   rxr/rxi : (LMl, K, TB)    (host pre-transposed so l is the leading dim)
#   out_ref : (layer_num, 5*K, TB)   rows: [p | beta_re | beta_im | mu | rate]
# ----------------------------------------------------------------------------
def _unfold_kernel(p_ref, thr_ref, thi_ref, txr_ref, txi_ref, rxr_ref, rxi_ref,
                   out_ref, *, sigma2, p_max, K, LMl, layer_num):
    inv_sqrt2 = 1.0 / math.sqrt(2.0)
    inv_log2 = 1.0 / math.log(2.0)

    thr = thr_ref[...]          # (LMl, TB)
    thi = thi_ref[...]
    txr = txr_ref[...]          # (LMl, K, TB)
    txi = txi_ref[...]
    rxr = rxr_ref[...]          # (LMl, K, TB)
    rxi = rxi_ref[...]

    # h = Rx @ diag(Theta) @ Tx  (complex), unrolled over the tiny L*Ml axis:
    #   h[k, j, b] = sum_l (Rx[k,l] * Theta[l]) * Tx[l,j]
    hr = None
    hi = None
    for l in range(LMl):
        rr = rxr[l]                            # (K, TB)  receive users k
        ri = rxi[l]
        tr = thr[l:l + 1, :]                   # (1, TB)
        ti = thi[l:l + 1, :]
        rtr = rr * tr - ri * ti                # Rx @ diag(Theta), column l
        rti = rr * ti + ri * tr
        xr = txr[l]                            # (K, TB)  transmit users j
        xi = txi[l]
        cr = rtr[:, None, :] * xr[None, :, :] - rti[:, None, :] * xi[None, :, :]
        ci = rtr[:, None, :] * xi[None, :, :] + rti[:, None, :] * xr[None, :, :]
        hr = cr if hr is None else hr + cr     # (K, K, TB)
        hi = ci if hi is None else hi + ci
    hsq = hr * hr + hi * hi                    # (K, K, TB)

    def diag_k(m):      # (K, K, TB) -> (K, TB): m[k, k, :]
        return jnp.concatenate([m[k, k:k + 1, :] for k in range(K)], axis=0)

    def sum_cols(m):    # (K, K, TB) -> (K, TB): sum over transmit index j
        acc = m[:, 0, :]
        for j in range(1, K):
            acc = acc + m[:, j, :]
        return acc

    dhr = diag_k(hr)    # (K, TB)
    dhi = diag_k(hi)
    dhsq = diag_k(hsq)

    # Unrolled layer loop.  Theta/Tx/Rx (hence h) are layer-invariant here (the
    # cvxpy Theta update has no Pallas equivalent), only the power p evolves.
    p = p_ref[...]      # (K, TB)
    for li in range(layer_num):
        p2 = p * p
        num1 = p2 * dhsq                               # diag of h_gain
        rs_hg = sum_cols(p2[None, :, :] * hsq)         # row sums of h_gain
        mu = num1 / (rs_hg - num1 + sigma2)
        one_mu = 1.0 + mu
        alpha = jnp.sqrt(one_mu * num1) / (rs_hg + sigma2) * inv_sqrt2
        a2 = alpha * alpha

        # den2[j] = (sum_k alpha[k]^2 * hsq[k, j])^2  (unrolled over k)
        col = None
        for k in range(K):
            term = a2[k:k + 1, :] * hsq[k]             # (K, TB) over columns j
            col = term if col is None else col + term
        num2 = one_mu * a2 * dhsq
        p_new = jnp.minimum(p_max, jnp.sqrt(num2 / (2.0 * (col * col))))

        sq1mu = jnp.sqrt(one_mu)
        hg2_rs = sum_cols((p_new * p_new)[None, :, :] * hsq)
        # beta is a terminal per-layer output -> approx reciprocal (EUP) is fine;
        # the log2 rate path below keeps exact division.
        inv_den3 = pl.reciprocal(hg2_rs + sigma2, approx=True)
        beta_r = inv_sqrt2 * sq1mu * p_new * dhr * inv_den3
        beta_i = inv_sqrt2 * sq1mu * p_new * dhi * inv_den3

        # per-user rate (objective terms) with the updated power (Theta fixed)
        num_o = (p_new * p_new) * dhsq
        rate = jnp.log(1.0 + num_o / (hg2_rs - num_o + sigma2)) * inv_log2

        # one packed lane-dense store per layer
        out_ref[li] = jnp.concatenate([p_new, beta_r, beta_i, mu, rate], axis=0)
        p = p_new


# ----------------------------------------------------------------------------
# Wrapper: host-side re-layout (batch -> lanes), padding, batch tiling.
# ----------------------------------------------------------------------------
def unfolding_forward(p, Theta, Tx, Rx, *, sigma2=1.0, p_max=1.0,
                      Ksize=(3, 1, 2, 1, 1), layer_num=3, batch_tile=1024):
    K, L, Ml, M, N = Ksize
    B = Tx.shape[0]
    KN, KM, LMl = K * N, K * M, L * Ml
    assert KM == KN, "diagonal extraction assumes K*M == K*N"

    # Same permute/view as the torch module, then move batch to the lane dim.
    Tx_m = jnp.transpose(Tx, (0, 1, 3, 2, 4, 5)).reshape(B, LMl, KN, 2)
    Rx_m = jnp.transpose(Rx, (0, 1, 3, 2, 4, 5)).reshape(B, KM, LMl, 2)
    txr = jnp.transpose(Tx_m[..., 0], (1, 2, 0)).astype(jnp.float32)   # (LMl, KN, B)
    txi = jnp.transpose(Tx_m[..., 1], (1, 2, 0)).astype(jnp.float32)
    rxr = jnp.transpose(Rx_m[..., 0], (2, 1, 0)).astype(jnp.float32)   # (LMl, KM, B)
    rxi = jnp.transpose(Rx_m[..., 1], (2, 1, 0)).astype(jnp.float32)
    Th = Theta.reshape(B, LMl, 2)
    thr = jnp.transpose(Th[..., 0], (1, 0)).astype(jnp.float32)        # (LMl, B)
    thi = jnp.transpose(Th[..., 1], (1, 0)).astype(jnp.float32)
    p0 = jnp.transpose(p.reshape(B, KN), (1, 0)).astype(jnp.float32)   # (KN, B)

    # Batch tiling: pad B to a multiple of the lane width / tile.  "edge" pad so
    # padded lanes compute finite garbage that is sliced off below.
    TB = min(batch_tile, _round_up(B, 128))
    B_pad = _round_up(B, TB)

    def pad_b(x):
        extra = B_pad - x.shape[-1]
        if extra == 0:
            return x
        widths = [(0, 0)] * (x.ndim - 1) + [(0, extra)]
        return jnp.pad(x, widths, mode="edge")

    p0p, thrp, thip = pad_b(p0), pad_b(thr), pad_b(thi)
    txrp, txip, rxrp, rxip = pad_b(txr), pad_b(txi), pad_b(rxr), pad_b(rxi)

    kernel = functools.partial(_unfold_kernel, sigma2=float(sigma2),
                               p_max=float(p_max), K=KN, LMl=LMl,
                               layer_num=int(layer_num))
    out = pl.pallas_call(
        kernel,
        out_shape=jax.ShapeDtypeStruct((layer_num, 5 * KN, B_pad), jnp.float32),
        grid_spec=pltpu.PrefetchScalarGridSpec(
            num_scalar_prefetch=0,
            grid=(B_pad // TB,),
            in_specs=[
                pl.BlockSpec((KN, TB), lambda b: (0, b)),
                pl.BlockSpec((LMl, TB), lambda b: (0, b)),
                pl.BlockSpec((LMl, TB), lambda b: (0, b)),
                pl.BlockSpec((LMl, KN, TB), lambda b: (0, 0, b)),
                pl.BlockSpec((LMl, KN, TB), lambda b: (0, 0, b)),
                pl.BlockSpec((LMl, KM, TB), lambda b: (0, 0, b)),
                pl.BlockSpec((LMl, KM, TB), lambda b: (0, 0, b)),
            ],
            out_specs=pl.BlockSpec((layer_num, 5 * KN, TB),
                                   lambda b: (0, 0, b)),
        ),
        # batch tiles are independent -> megacore sharding on v7x
        compiler_params=pltpu.CompilerParams(dimension_semantics=("parallel",)),
    )(p0p, thrp, thip, txrp, txip, rxrp, rxip)

    out = out[..., :B]                              # drop padded lanes
    results = []
    for li in range(layer_num):
        layer = out[li]                             # (5*K, B)
        p_out = layer[0 * KN:1 * KN].T              # (B, K)
        beta_r = layer[1 * KN:2 * KN].T
        beta_i = layer[2 * KN:3 * KN].T
        mu = layer[3 * KN:4 * KN].T
        rate = layer[4 * KN:5 * KN].T
        capacity = jnp.mean(jnp.sum(rate, axis=1))  # mean over the FULL batch
        # TODO(synk): OneStep.cvx_opt is a per-sample cvxpy convex solve with no
        # Pallas equivalent; Theta is kept fixed across layers here.
        results.append(dict(p=p_out, Theta=Theta, beta_real=beta_r,
                            beta_imag=beta_i, mu=mu, capacity=capacity))
    return results


# ----------------------------------------------------------------------------
# Pure-JAX reference (mirrors the torch math) used for a correctness check.
# ----------------------------------------------------------------------------
def _onestep_ref(p, thr, thi, txr, txi, rxr, rxi, sigma2, p_max):
    rtr = rxr * thr[:, None, :] - rxi * thi[:, None, :]
    rti = rxr * thi[:, None, :] + rxi * thr[:, None, :]
    hr = rtr @ txr - rti @ txi
    hi = rtr @ txi + rti @ txr
    hsq = hr ** 2 + hi ** 2
    hg = (p ** 2)[:, None, :] * hsq
    num1 = jnp.diagonal(hg, axis1=1, axis2=2)
    rs = hg.sum(axis=2)
    mu = num1 / (rs - num1 + sigma2)
    alpha = jnp.sqrt((1 + mu) * num1) / (rs + sigma2) / math.sqrt(2)
    num2 = (1 + mu) * alpha ** 2 * jnp.diagonal(hsq, axis1=1, axis2=2)
    den2 = ((alpha ** 2)[:, :, None] * hsq).sum(axis=1) ** 2
    p_out = jnp.minimum(p_max, jnp.sqrt(num2 / (2 * den2)))
    nr = (1 / math.sqrt(2)) * jnp.sqrt(1 + mu) * p_out * jnp.diagonal(hr, axis1=1, axis2=2)
    ni = (1 / math.sqrt(2)) * jnp.sqrt(1 + mu) * p_out * jnp.diagonal(hi, axis1=1, axis2=2)
    hg2 = (p_out ** 2)[:, None, :] * hsq
    den3 = hg2.sum(axis=2) + sigma2
    beta_r, beta_i = nr / den3, ni / den3
    num_o = jnp.diagonal(hg2, axis1=1, axis2=2)
    den_o = hg2.sum(axis=2) - num_o + sigma2
    rate = jnp.log(1 + num_o / den_o) / math.log(2)
    return p_out, beta_r, beta_i, mu, rate


if __name__ == "__main__":
    Ksize = (3, 1, 2, 1, 1)          # K, L, Ml, M, N (module defaults)
    K, L, Ml, M, N = Ksize
    B = 2
    layer_num = 3
    sigma2, p_max = 1.0, 1.0

    key = jax.random.PRNGKey(0)
    k1, k2, k3, k4 = jax.random.split(key, 4)
    p0 = jax.random.uniform(k1, (B, K), jnp.float32, 0.1, 1.0)
    angles = jax.random.uniform(k2, (B, L, Ml), jnp.float32, 0.0, 2 * math.pi)
    Theta = jnp.stack([jnp.cos(angles), jnp.sin(angles)], axis=-1)     # (B,L,Ml,2)
    Tx = jax.random.normal(k3, (B, L, K, Ml, N, 2), jnp.float32)
    Rx = jax.random.normal(k4, (B, K, L, M, Ml, 2), jnp.float32)

    results = unfolding_forward(p0, Theta, Tx, Rx, sigma2=sigma2, p_max=p_max,
                                Ksize=Ksize, layer_num=layer_num)
    jax.block_until_ready(results)

    # reference check (same layer loop, Theta fixed, pure JAX, batch-major)
    Tx_m = jnp.transpose(Tx, (0, 1, 3, 2, 4, 5)).reshape(B, L * Ml, K * N, 2)
    Rx_m = jnp.transpose(Rx, (0, 1, 3, 2, 4, 5)).reshape(B, K * M, L * Ml, 2)
    txr_r, txi_r = Tx_m[..., 0], Tx_m[..., 1]
    rxr_r, rxi_r = Rx_m[..., 0], Rx_m[..., 1]
    Th = Theta.reshape(B, L * Ml, 2)
    thr_r, thi_r = Th[..., 0], Th[..., 1]
    p_ref = p0
    for li in range(layer_num):
        p_ref, br_ref, bi_ref, mu_ref, rate_ref = _onestep_ref(
            p_ref, thr_r, thi_r, txr_r, txi_r, rxr_r, rxi_r, sigma2, p_max)
        np.testing.assert_allclose(np.asarray(results[li]["p"]),
                                   np.asarray(p_ref), rtol=5e-3, atol=1e-3)
        np.testing.assert_allclose(np.asarray(results[li]["mu"]),
                                   np.asarray(mu_ref), rtol=5e-3, atol=1e-3)
        np.testing.assert_allclose(np.asarray(results[li]["beta_real"]),
                                   np.asarray(br_ref), rtol=5e-3, atol=1e-3)
        np.testing.assert_allclose(np.asarray(results[li]["beta_imag"]),
                                   np.asarray(bi_ref), rtol=5e-3, atol=1e-3)
        np.testing.assert_allclose(float(results[li]["capacity"]),
                                   float(jnp.mean(jnp.sum(rate_ref, axis=1))),
                                   rtol=5e-3, atol=1e-3)

    print("KERNEL_OK")
</pallas_src>

<mosaic_0001>
module attributes {stable_mosaic.version = 11 : i64} {
  func.func @_unfold_kernel(%arg0: i32, %arg1: memref<3x128xf32, #tpu.memory_space<vmem>>, %arg2: memref<2x128xf32, #tpu.memory_space<vmem>>, %arg3: memref<2x128xf32, #tpu.memory_space<vmem>>, %arg4: memref<2x3x128xf32, #tpu.memory_space<vmem>>, %arg5: memref<2x3x128xf32, #tpu.memory_space<vmem>>, %arg6: memref<2x3x128xf32, #tpu.memory_space<vmem>>, %arg7: memref<2x3x128xf32, #tpu.memory_space<vmem>>, %arg8: memref<3x15x128xf32, #tpu.memory_space<vmem>>) attributes {dimension_semantics = [#tpu.dimension_semantics<parallel>], iteration_bounds = array<i64: 1>, scalar_prefetch = 0 : i64, scratch_operands = 0 : i64, tpu.core_type = #tpu.core_type<tc>, window_params = [{transform_indices = @transform_0, window_bounds = array<i64: 3, 128>}, {transform_indices = @transform_1, window_bounds = array<i64: 2, 128>}, {transform_indices = @transform_2, window_bounds = array<i64: 2, 128>}, {transform_indices = @transform_3, window_bounds = array<i64: 2, 3, 128>}, {transform_indices = @transform_4, window_bounds = array<i64: 2, 3, 128>}, {transform_indices = @transform_5, window_bounds = array<i64: 2, 3, 128>}, {transform_indices = @transform_6, window_bounds = array<i64: 2, 3, 128>}, {transform_indices = @transform_7, window_bounds = array<i64: 3, 15, 128>}]} {
    %c0 = arith.constant 0 : index
    %c0_0 = arith.constant 0 : index
    %0 = vector.load %arg2[%c0, %c0_0] : memref<2x128xf32, #tpu.memory_space<vmem>>, vector<2x128xf32>
    %c0_1 = arith.constant 0 : index
    %c0_2 = arith.constant 0 : index
    %1 = vector.load %arg3[%c0_1, %c0_2] : memref<2x128xf32, #tpu.memory_space<vmem>>, vector<2x128xf32>
    %c0_3 = arith.constant 0 : index
    %c0_4 = arith.constant 0 : index
    %c0_5 = arith.constant 0 : index
    %2 = vector.load %arg4[%c0_3, %c0_4, %c0_5] : memref<2x3x128xf32, #tpu.memory_space<vmem>>, vector<2x3x128xf32>
    %c0_6 = arith.constant 0 : index
    %c0_7 = arith.constant 0 : index
    %c0_8 = arith.constant 0 : index
    %3 = vector.load %arg5[%c0_6, %c0_7, %c0_8] : memref<2x3x128xf32, #tpu.memory_space<vmem>>, vector<2x3x128xf32>
    %c0_9 = arith.constant 0 : index
    %c0_10 = arith.constant 0 : index
    %c0_11 = arith.constant 0 : index
    %4 = vector.load %arg6[%c0_9, %c0_10, %c0_11] : memref<2x3x128xf32, #tpu.memory_space<vmem>>, vector<2x3x128xf32>
    %c0_12 = arith.constant 0 : index
    %c0_13 = arith.constant 0 : index
    %c0_14 = arith.constant 0 : index
    %5 = vector.load %arg7[%c0_12, %c0_13, %c0_14] : memref<2x3x128xf32, #tpu.memory_space<vmem>>, vector<2x3x128xf32>
    %6 = vector.extract_strided_slice %4 {offsets = [0, 0, 0], sizes = [1, 3, 128], strides = [1, 1, 1]} : vector<2x3x128xf32> to vector<1x3x128xf32>
    %7 = vector.shape_cast %6 : vector<1x3x128xf32> to vector<3x128xf32>
    %8 = vector.extract_strided_slice %5 {offsets = [0, 0, 0], sizes = [1, 3, 128], strides = [1, 1, 1]} : vector<2x3x128xf32> to vector<1x3x128xf32>
    %9 = vector.shape_cast %8 : vector<1x3x128xf32> to vector<3x128xf32>
    %10 = vector.extract_strided_slice %0 {offsets = [0, 0], sizes = [1, 128], strides = [1, 1]} : vector<2x128xf32> to vector<1x128xf32>
    %11 = vector.extract_strided_slice %1 {offsets = [0, 0], sizes = [1, 128], strides = [1, 1]} : vector<2x128xf32> to vector<1x128xf32>
    %12 = vector.broadcast %10 : vector<1x128xf32> to vector<3x128xf32>
    %13 = arith.mulf %7, %12 : vector<3x128xf32>
    %14 = vector.broadcast %11 : vector<1x128xf32> to vector<3x128xf32>
    %15 = arith.mulf %9, %14 : vector<3x128xf32>
    %16 = arith.subf %13, %15 : vector<3x128xf32>
    %17 = vector.broadcast %11 : vector<1x128xf32> to vector<3x128xf32>
    %18 = arith.mulf %7, %17 : vector<3x128xf32>
    %19 = vector.broadcast %10 : vector<1x128xf32> to vector<3x128xf32>
    %20 = arith.mulf %9, %19 : vector<3x128xf32>
    %21 = arith.addf %18, %20 : vector<3x128xf32>
    %22 = vector.extract_strided_slice %2 {offsets = [0, 0, 0], sizes = [1, 3, 128], strides = [1, 1, 1]} : vector<2x3x128xf32> to vector<1x3x128xf32>
    %23 = vector.shape_cast %22 : vector<1x3x128xf32> to vector<3x128xf32>
    %24 = vector.extract_strided_slice %3 {offsets = [0, 0, 0], sizes = [1, 3, 128], strides = [1, 1, 1]} : vector<2x3x128xf32> to vector<1x3x128xf32>
    %25 = vector.shape_cast %24 : vector<1x3x128xf32> to vector<3x128xf32>
    %26 = vector.shape_cast %16 : vector<3x128xf32> to vector<3x1x128xf32>
    %27 = vector.shape_cast %23 : vector<3x128xf32> to vector<1x3x128xf32>
    %28 = vector.broadcast %26 : vector<3x1x128xf32> to vector<3x3x128xf32>
    %29 = vector.broadcast %27 : vector<1x3x128xf32> to vector<3x3x128xf32>
    %30 = arith.mulf %28, %29 : vector<3x3x128xf32>
    %31 = vector.shape_cast %21 : vector<3x128xf32> to vector<3x1x128xf32>
    %32 = vector.shape_cast %25 : vector<3x128xf32> to vector<1x3x128xf32>
    %33 = vector.broadcast %31 : vector<3x1x128xf32> to vector<3x3x128xf32>
    %34 = vector.broadcast %32 : vector<1x3x128xf32> to vector<3x3x128xf32>
    %35 = arith.mulf %33, %34 : vector<3x3x128xf32>
    %36 = arith.subf %30, %35 : vector<3x3x128xf32>
    %37 = vector.shape_cast %16 : vector<3x128xf32> to vector<3x1x128xf32>
    %38 = vector.shape_cast %25 : vector<3x128xf32> to vector<1x3x128xf32>
    %39 = vector.broadcast %37 : vector<3x1x128xf32> to vector<3x3x128xf32>
    %40 = vector.broadcast %38 : vector<1x3x128xf32> to vector<3x3x128xf32>
    %41 = arith.mulf %39, %40 : vector<3x3x128xf32>
    %42 = vector.shape_cast %21 : vector<3x128xf32> to vector<3x1x128xf32>
    %43 = vector.shape_cast %23 : vector<3x128xf32> to vector<1x3x128xf32>
    %44 = vector.broadcast %42 : vector<3x1x128xf32> to vector<3x3x128xf32>
    %45 = vector.broadcast %43 : vector<1x3x128xf32> to vector<3x3x128xf32>
    %46 = arith.mulf %44, %45 : vector<3x3x128xf32>
    %47 = arith.addf %41, %46 : vector<3x3x128xf32>
    %48 = vector.extract_strided_slice %4 {offsets = [1, 0, 0], sizes = [1, 3, 128], strides = [1, 1, 1]} : vector<2x3x128xf32> to vector<1x3x128xf32>
    %49 = vector.shape_cast %48 : vector<1x3x128xf32> to vector<3x128xf32>
    %50 = vector.extract_strided_slice %5 {offsets = [1, 0, 0], sizes = [1, 3, 128], strides = [1, 1, 1]} : vector<2x3x128xf32> to vector<1x3x128xf32>
    %51 = vector.shape_cast %50 : vector<1x3x128xf32> to vector<3x128xf32>
    %52 = vector.extract_strided_slice %0 {offsets = [1, 0], sizes = [1, 128], strides = [1, 1]} : vector<2x128xf32> to vector<1x128xf32>
    %53 = vector.extract_strided_slice %1 {offsets = [1, 0], sizes = [1, 128], strides = [1, 1]} : vector<2x128xf32> to vector<1x128xf32>
    %54 = vector.broadcast %52 : vector<1x128xf32> to vector<3x128xf32>
    %55 = arith.mulf %49, %54 : vector<3x128xf32>
    %56 = vector.broadcast %53 : vector<1x128xf32> to vector<3x128xf32>
    %57 = arith.mulf %51, %56 : vector<3x128xf32>
    %58 = arith.subf %55, %57 : vector<3x128xf32>
    %59 = vector.broadcast %53 : vector<1x128xf32> to vector<3x128xf32>
    %60 = arith.mulf %49, %59 : vector<3x128xf32>
    %61 = vector.broadcast %52 : vector<1x128xf32> to vector<3x128xf32>
    %62 = arith.mulf %51, %61 : vector<3x128xf32>
    %63 = arith.addf %60, %62 : vector<3x128xf32>
    %64 = vector.extract_strided_slice %2 {offsets = [1, 0, 0], sizes = [1, 3, 128], strides = [1, 1, 1]} : vector<2x3x128xf32> to vector<1x3x128xf32>
    %65 = vector.shape_cast %64 : vector<1x3x128xf32> to vector<3x128xf32>
    %66 = vector.extract_strided_slice %3 {offsets = [1, 0, 0], sizes = [1, 3, 128], strides = [1, 1, 1]} : vector<2x3x128xf32> to vector<1x3x128xf32>
    %67 = vector.shape_cast %66 : vector<1x3x128xf32> to vector<3x128xf32>
    %68 = vector.shape_cast %58 : vector<3x128xf32> to vector<3x1x128xf32>
    %69 = vector.shape_cast %65 : vector<3x128xf32> to vector<1x3x128xf32>
    %70 = vector.broadcast %68 : vector<3x1x128xf32> to vector<3x3x128xf32>
    %71 = vector.broadcast %69 : vector<1x3x128xf32> to vector<3x3x128xf32>
    %72 = arith.mulf %70, %71 : vector<3x3x128xf32>
    %73 = vector.shape_cast %63 : vector<3x128xf32> to vector<3x1x128xf32>
    %74 = vector.shape_cast %67 : vector<3x128xf32> to vector<1x3x128xf32>
    %75 = vector.broadcast %73 : vector<3x1x128xf32> to vector<3x3x128xf32>
    %76 = vector.broadcast %74 : vector<1x3x128xf32> to vector<3x3x128xf32>
    %77 = arith.mulf %75, %76 : vector<3x3x128xf32>
    %78 = arith.subf %72, %77 : vector<3x3x128xf32>
    %79 = vector.shape_cast %58 : vector<3x128xf32> to vector<3x1x128xf32>
    %80 = vector.shape_cast %67 : vector<3x128xf32> to vector<1x3x128xf32>
    %81 = vector.broadcast %79 : vector<3x1x128xf32> to vector<3x3x128xf32>
    %82 = vector.broadcast %80 : vector<1x3x128xf32> to vector<3x3x128xf32>
    %83 = arith.mulf %81, %82 : vector<3x3x128xf32>
    %84 = vector.shape_cast %63 : vector<3x128xf32> to vector<3x1x128xf32>
    %85 = vector.shape_cast %65 : vector<3x128xf32> to vector<1x3x128xf32>
    %86 = vector.broadcast %84 : vector<3x1x128xf32> to vector<3x3x128xf32>
    %87 = vector.broadcast %85 : vector<1x3x128xf32> to vector<3x3x128xf32>
    %88 = arith.mulf %86, %87 : vector<3x3x128xf32>
    %89 = arith.addf %83, %88 : vector<3x3x128xf32>
    %90 = arith.addf %36, %78 : vector<3x3x128xf32>
    %91 = arith.addf %47, %89 : vector<3x3x128xf32>
    %92 = arith.mulf %90, %90 : vector<3x3x128xf32>
    %93 = arith.mulf %91, %91 : vector<3x3x128xf32>
    %94 = arith.addf %92, %93 : vector<3x3x128xf32>
    %95 = vector.extract_strided_slice %90 {offsets = [0, 0, 0], sizes = [1, 1, 128], strides = [1, 1, 1]} : vector<3x3x128xf32> to vector<1x1x128xf32>
    %96 = vector.shape_cast %95 : vector<1x1x128xf32> to vector<1x128xf32>
    %97 = vector.extract_strided_slice %90 {offsets = [1, 1, 0], sizes = [1, 1, 128], strides = [1, 1, 1]} : vector<3x3x128xf32> to vector<1x1x128xf32>
    %98 = vector.shape_cast %97 : vector<1x1x128xf32> to vector<1x128xf32>
    %99 = vector.extract_strided_slice %90 {offsets = [2, 2, 0], sizes = [1, 1, 128], strides = [1, 1, 1]} : vector<3x3x128xf32> to vector<1x1x128xf32>
    %100 = vector.shape_cast %99 : vector<1x1x128xf32> to vector<1x128xf32>
    %101 = tpu.concatenate %96, %98, %100 in 0 : vector<1x128xf32>, vector<1x128xf32>, vector<1x128xf32> -> vector<3x128xf32>
    %102 = vector.extract_strided_slice %91 {offsets = [0, 0, 0], sizes = [1, 1, 128], strides = [1, 1, 1]} : vector<3x3x128xf32> to vector<1x1x128xf32>
    %103 = vector.shape_cast %102 : vector<1x1x128xf32> to vector<1x128xf32>
    %104 = vector.extract_strided_slice %91 {offsets = [1, 1, 0], sizes = [1, 1, 128], strides = [1, 1, 1]} : vector<3x3x128xf32> to vector<1x1x128xf32>
    %105 = vector.shape_cast %104 : vector<1x1x128xf32> to vector<1x128xf32>
    %106 = vector.extract_strided_slice %91 {offsets = [2, 2, 0], sizes = [1, 1, 128], strides = [1, 1, 1]} : vector<3x3x128xf32> to vector<1x1x128xf32>
    %107 = vector.shape_cast %106 : vector<1x1x128xf32> to vector<1x128xf32>
    %108 = tpu.concatenate %103, %105, %107 in 0 : vector<1x128xf32>, vector<1x128xf32>, vector<1x128xf32> -> vector<3x128xf32>
    %109 = vector.extract_strided_slice %94 {offsets = [0, 0, 0], sizes = [1, 1, 128], strides = [1, 1, 1]} : vector<3x3x128xf32> to vector<1x1x128xf32>
    %110 = vector.shape_cast %109 : vector<1x1x128xf32> to vector<1x128xf32>
    %111 = vector.extract_strided_slice %94 {offsets = [1, 1, 0], sizes = [1, 1, 128], strides = [1, 1, 1]} : vector<3x3x128xf32> to vector<1x1x128xf32>
    %112 = vector.shape_cast %111 : vector<1x1x128xf32> to vector<1x128xf32>
    %113 = vector.extract_strided_slice %94 {offsets = [2, 2, 0], sizes = [1, 1, 128], strides = [1, 1, 1]} : vector<3x3x128xf32> to vector<1x1x128xf32>
    %114 = vector.shape_cast %113 : vector<1x1x128xf32> to vector<1x128xf32>
    %115 = tpu.concatenate %110, %112, %114 in 0 : vector<1x128xf32>, vector<1x128xf32>, vector<1x128xf32> -> vector<3x128xf32>
    %c0_15 = arith.constant 0 : index
    %c0_16 = arith.constant 0 : index
    %116 = vector.load %arg1[%c0_15, %c0_16] : memref<3x128xf32, #tpu.memory_space<vmem>>, vector<3x128xf32>
    %117 = arith.mulf %116, %116 : vector<3x128xf32>
    %118 = arith.mulf %117, %115 : vector<3x128xf32>
    %119 = vector.shape_cast %117 : vector<3x128xf32> to vector<1x3x128xf32>
    %120 = vector.broadcast %119 : vector<1x3x128xf32> to vector<3x3x128xf32>
    %121 = arith.mulf %120, %94 : vector<3x3x128xf32>
    %122 = vector.extract_strided_slice %121 {offsets = [0, 0, 0], sizes = [3, 1, 128], strides = [1, 1, 1]} : vector<3x3x128xf32> to vector<3x1x128xf32>
    %123 = vector.shape_cast %122 : vector<3x1x128xf32> to vector<3x128xf32>
    %124 = vector.extract_strided_slice %121 {offsets = [0, 1, 0], sizes = [3, 1, 128], strides = [1, 1, 1]} : vector<3x3x128xf32> to vector<3x1x128xf32>
    %125 = vector.shape_cast %124 : vector<3x1x128xf32> to vector<3x128xf32>
    %126 = arith.addf %123, %125 : vector<3x128xf32>
    %127 = vector.extract_strided_slice %121 {offsets = [0, 2, 0], sizes = [3, 1, 128], strides = [1, 1, 1]} : vector<3x3x128xf32> to vector<3x1x128xf32>
    %128 = vector.shape_cast %127 : vector<3x1x128xf32> to vector<3x128xf32>
    %129 = arith.addf %126, %128 : vector<3x128xf32>
    %130 = arith.subf %129, %118 : vector<3x128xf32>
    %cst = arith.constant 1.000000e+00 : f32
    %131 = vector.broadcast %cst : f32 to vector<3x128xf32>
    %132 = arith.addf %130, %131 : vector<3x128xf32>
    %133 = arith.divf %118, %132 : vector<3x128xf32>
    %cst_17 = arith.constant 1.000000e+00 : f32
    %134 = vector.broadcast %cst_17 : f32 to vector<3x128xf32>
    %135 = arith.addf %134, %133 : vector<3x128xf32>
    %136 = arith.mulf %135, %118 : vector<3x128xf32>
    %137 = math.sqrt %136 : vector<3x128xf32>
    %cst_18 = arith.constant 1.000000e+00 : f32
    %138 = vector.broadcast %cst_18 : f32 to vector<3x128xf32>
    %139 = arith.addf %129, %138 : vector<3x128xf32>
    %140 = arith.divf %137, %139 : vector<3x128xf32>
    %cst_19 = arith.constant 0.707106769 : f32
    %141 = vector.broadcast %cst_19 : f32 to vector<3x128xf32>
    %142 = arith.mulf %140, %141 : vector<3x128xf32>
    %143 = arith.mulf %142, %142 : vector<3x128xf32>
    %144 = vector.extract_strided_slice %143 {offsets = [0, 0], sizes = [1, 128], strides = [1, 1]} : vector<3x128xf32> to vector<1x128xf32>
    %145 = vector.extract_strided_slice %94 {offsets = [0, 0, 0], sizes = [1, 3, 128], strides = [1, 1, 1]} : vector<3x3x128xf32> to vector<1x3x128xf32>
    %146 = vector.shape_cast %145 : vector<1x3x128xf32> to vector<3x128xf32>
    %147 = vector.broadcast %144 : vector<1x128xf32> to vector<3x128xf32>
    %148 = arith.mulf %147, %146 : vector<3x128xf32>
    %149 = vector.extract_strided_slice %143 {offsets = [1, 0], sizes = [1, 128], strides = [1, 1]} : vector<3x128xf32> to vector<1x128xf32>
    %150 = vector.extract_strided_slice %94 {offsets = [1, 0, 0], sizes = [1, 3, 128], strides = [1, 1, 1]} : vector<3x3x128xf32> to vector<1x3x128xf32>
    %151 = vector.shape_cast %150 : vector<1x3x128xf32> to vector<3x128xf32>
    %152 = vector.broadcast %149 : vector<1x128xf32> to vector<3x128xf32>
    %153 = arith.mulf %152, %151 : vector<3x128xf32>
    %154 = arith.addf %148, %153 : vector<3x128xf32>
    %155 = vector.extract_strided_slice %143 {offsets = [2, 0], sizes = [1, 128], strides = [1, 1]} : vector<3x128xf32> to vector<1x128xf32>
    %156 = vector.extract_strided_slice %94 {offsets = [2, 0, 0], sizes = [1, 3, 128], strides = [1, 1, 1]} : vector<3x3x128xf32> to vector<1x3x128xf32>
    %157 = vector.shape_cast %156 : vector<1x3x128xf32> to vector<3x128xf32>
    %158 = vector.broadcast %155 : vector<1x128xf32> to vector<3x128xf32>
    %159 = arith.mulf %158, %157 : vector<3x128xf32>
    %160 = arith.addf %154, %159 : vector<3x128xf32>
    %161 = arith.mulf %135, %143 : vector<3x128xf32>
    %162 = arith.mulf %161, %115 : vector<3x128xf32>
    %163 = arith.mulf %160, %160 : vector<3x128xf32>
    %cst_20 = arith.constant 2.000000e+00 : f32
    %164 = vector.broadcast %cst_20 : f32 to vector<3x128xf32>
    %165 = arith.mulf %164, %163 : vector<3x128xf32>
    %166 = arith.divf %162, %165 : vector<3x128xf32>
    %167 = math.sqrt %166 : vector<3x128xf32>
    %cst_21 = arith.constant 1.000000e+00 : f32
    %168 = vector.broadcast %cst_21 : f32 to vector<3x128xf32>
    %169 = arith.minimumf %168, %167 : vector<3x128xf32>
    %170 = math.sqrt %135 : vector<3x128xf32>
    %171 = arith.mulf %169, %169 : vector<3x128xf32>
    %172 = vector.shape_cast %171 : vector<3x128xf32> to vector<1x3x128xf32>
    %173 = vector.broadcast %172 : vector<1x3x128xf32> to vector<3x3x128xf32>
    %174 = arith.mulf %173, %94 : vector<3x3x128xf32>
    %175 = vector.extract_strided_slice %174 {offsets = [0, 0, 0], sizes = [3, 1, 128], strides = [1, 1, 1]} : vector<3x3x128xf32> to vector<3x1x128xf32>
    %176 = vector.shape_cast %175 : vector<3x1x128xf32> to vector<3x128xf32>
    %177 = vector.extract_strided_slice %174 {offsets = [0, 1, 0], sizes = [3, 1, 128], strides = [1, 1, 1]} : vector<3x3x128xf32> to vector<3x1x128xf32>
    %178 = vector.shape_cast %177 : vector<3x1x128xf32> to vector<3x128xf32>
    %179 = arith.addf %176, %178 : vector<3x128xf32>
    %180 = vector.extract_strided_slice %174 {offsets = [0, 2, 0], sizes = [3, 1, 128], strides = [1, 1, 1]} : vector<3x3x128xf32> to vector<3x1x128xf32>
    %181 = vector.shape_cast %180 : vector<3x1x128xf32> to vector<3x128xf32>
    %182 = arith.addf %179, %181 : vector<3x128xf32>
    %cst_22 = arith.constant 1.000000e+00 : f32
    %183 = vector.broadcast %cst_22 : f32 to vector<3x128xf32>
    %184 = arith.addf %182, %183 : vector<3x128xf32>
    %185 = tpu.reciprocal %184 {approx = true} : vector<3x128xf32> -> vector<3x128xf32>
    %cst_23 = arith.constant 0.707106769 : f32
    %186 = vector.broadcast %cst_23 : f32 to vector<3x128xf32>
    %187 = arith.mulf %186, %170 : vector<3x128xf32>
    %188 = arith.mulf %187, %169 : vector<3x128xf32>
    %189 = arith.mulf %188, %101 : vector<3x128xf32>
    %190 = arith.mulf %189, %185 : vector<3x128xf32>
    %cst_24 = arith.constant 0.707106769 : f32
    %191 = vector.broadcast %cst_24 : f32 to vector<3x128xf32>
    %192 = arith.mulf %191, %170 : vector<3x128xf32>
    %193 = arith.mulf %192, %169 : vector<3x128xf32>
    %194 = arith.mulf %193, %108 : vector<3x128xf32>
    %195 = arith.mulf %194, %185 : vector<3x128xf32>
    %196 = arith.mulf %169, %169 : vector<3x128xf32>
    %197 = arith.mulf %196, %115 : vector<3x128xf32>
    %198 = arith.subf %182, %197 : vector<3x128xf32>
    %cst_25 = arith.constant 1.000000e+00 : f32
    %199 = vector.broadcast %cst_25 : f32 to vector<3x128xf32>
    %200 = arith.addf %198, %199 : vector<3x128xf32>
    %201 = arith.divf %197, %200 : vector<3x128xf32>
    %cst_26 = arith.constant 1.000000e+00 : f32
    %202 = vector.broadcast %cst_26 : f32 to vector<3x128xf32>
    %203 = arith.addf %202, %201 : vector<3x128xf32>
    %204 = math.log %203 : vector<3x128xf32>
    %cst_27 = arith.constant 1.44269502 : f32
    %205 = vector.broadcast %cst_27 : f32 to vector<3x128xf32>
    %206 = arith.mulf %204, %205 : vector<3x128xf32>
    %207 = tpu.concatenate %169, %190, %195, %133, %206 in 0 : vector<3x128xf32>, vector<3x128xf32>, vector<3x128xf32>, vector<3x128xf32>, vector<3x128xf32> -> vector<15x128xf32>
    %c0_28 = arith.constant 0 : index
    %c0_29 = arith.constant 0 : index
    %c0_30 = arith.constant 0 : index
    %208 = vector.load %arg8[%c0_28, %c0_29, %c0_30] : memref<3x15x128xf32, #tpu.memory_space<vmem>>, vector<1x15x128xf32>
    %209 = vector.shape_cast %208 : vector<1x15x128xf32> to vector<15x128xf32>
    %210 = vector.shape_cast %207 : vector<15x128xf32> to vector<1x15x128xf32>
    tpu.vector_store %arg8[%c0_28, %c0_29, %c0_30], %210 {strides = array<i32>} : memref<3x15x128xf32, #tpu.memory_space<vmem>>, vector<1x15x128xf32>,
    %211 = arith.mulf %169, %169 : vector<3x128xf32>
    %212 = arith.mulf %211, %115 : vector<3x128xf32>
    %213 = vector.shape_cast %211 : vector<3x128xf32> to vector<1x3x128xf32>
    %214 = vector.broadcast %213 : vector<1x3x128xf32> to vector<3x3x128xf32>
    %215 = arith.mulf %214, %94 : vector<3x3x128xf32>
    %216 = vector.extract_strided_slice %215 {offsets = [0, 0, 0], sizes = [3, 1, 128], strides = [1, 1, 1]} : vector<3x3x128xf32> to vector<3x1x128xf32>
    %217 = vector.shape_cast %216 : vector<3x1x128xf32> to vector<3x128xf32>
    %218 = vector.extract_strided_slice %215 {offsets = [0, 1, 0], sizes = [3, 1, 128], strides = [1, 1, 1]} : vector<3x3x128xf32> to vector<3x1x128xf32>
    %219 = vector.shape_cast %218 : vector<3x1x128xf32> to vector<3x128xf32>
    %220 = arith.addf %217, %219 : vector<3x128xf32>
    %221 = vector.extract_strided_slice %215 {offsets = [0, 2, 0], sizes = [3, 1, 128], strides = [1, 1, 1]} : vector<3x3x128xf32> to vector<3x1x128xf32>
    %222 = vector.shape_cast %221 : vector<3x1x128xf32> to vector<3x128xf32>
    %223 = arith.addf %220, %222 : vector<3x128xf32>
    %224 = arith.subf %223, %212 : vector<3x128xf32>
    %cst_31 = arith.constant 1.000000e+00 : f32
    %225 = vector.broadcast %cst_31 : f32 to vector<3x128xf32>
    %226 = arith.addf %224, %225 : vector<3x128xf32>
    %227 = arith.divf %212, %226 : vector<3x128xf32>
    %cst_32 = arith.constant 1.000000e+00 : f32
    %228 = vector.broadcast %cst_32 : f32 to vector<3x128xf32>
    %229 = arith.addf %228, %227 : vector<3x128xf32>
    %230 = arith.mulf %229, %212 : vector<3x128xf32>
    %231 = math.sqrt %230 : vector<3x128xf32>
    %cst_33 = arith.constant 1.000000e+00 : f32
    %232 = vector.broadcast %cst_33 : f32 to vector<3x128xf32>
    %233 = arith.addf %223, %232 : vector<3x128xf32>
    %234 = arith.divf %231, %233 : vector<3x128xf32>
    %cst_34 = arith.constant 0.707106769 : f32
    %235 = vector.broadcast %cst_34 : f32 to vector<3x128xf32>
    %236 = arith.mulf %234, %235 : vector<3x128xf32>
    %237 = arith.mulf %236, %236 : vector<3x128xf32>
    %238 = vector.extract_strided_slice %237 {offsets = [0, 0], sizes = [1, 128], strides = [1, 1]} : vector<3x128xf32> to vector<1x128xf32>
    %239 = vector.extract_strided_slice %94 {offsets = [0, 0, 0], sizes = [1, 3, 128], strides = [1, 1, 1]} : vector<3x3x128xf32> to vector<1x3x128xf32>
    %240 = vector.shape_cast %239 : vector<1x3x128xf32> to vector<3x128xf32>
    %241 = vector.broadcast %238 : vector<1x128xf32> to vector<3x128xf32>
    %242 = arith.mulf %241, %240 : vector<3x128xf32>
    %243 = vector.extract_strided_slice %237 {offsets = [1, 0], sizes = [1, 128], strides = [1, 1]} : vector<3x128xf32> to vector<1x128xf32>
    %244 = vector.extract_strided_slice %94 {offsets = [1, 0, 0], sizes = [1, 3, 128], strides = [1, 1, 1]} : vector<3x3x128xf32> to vector<1x3x128xf32>
    %245 = vector.shape_cast %244 : vector<1x3x128xf32> to vector<3x128xf32>
    %246 = vector.broadcast %243 : vector<1x128xf32> to vector<3x128xf32>
    %247 = arith.mulf %246, %245 : vector<3x128xf32>
    %248 = arith.addf %242, %247 : vector<3x128xf32>
    %249 = vector.extract_strided_slice %237 {offsets = [2, 0], sizes = [1, 128], strides = [1, 1]} : vector<3x128xf32> to vector<1x128xf32>
    %250 = vector.extract_strided_slice %94 {offsets = [2, 0, 0], sizes = [1, 3, 128], strides = [1, 1, 1]} : vector<3x3x128xf32> to vector<1x3x128xf32>
    %251 = vector.shape_cast %250 : vector<1x3x128xf32> to vector<3x128xf32>
    %252 = vector.broadcast %249 : vector<1x128xf32> to vector<3x128xf32>
    %253 = arith.mulf %252, %251 : vector<3x128xf32>
    %254 = arith.addf %248, %253 : vector<3x128xf32>
    %255 = arith.mulf %229, %237 : vector<3x128xf32>
    %256 = arith.mulf %255, %115 : vector<3x128xf32>
    %257 = arith.mulf %254, %254 : vector<3x128xf32>
    %cst_35 = arith.constant 2.000000e+00 : f32
    %258 = vector.broadcast %cst_35 : f32 to vector<3x128xf32>
    %259 = arith.mulf %258, %257 : vector<3x128xf32>
    %260 = arith.divf %256, %259 : vector<3x128xf32>
    %261 = math.sqrt %260 : vector<3x128xf32>
    %cst_36 = arith.constant 1.000000e+00 : f32
    %262 = vector.broadcast %cst_36 : f32 to vector<3x128xf32>
    %263 = arith.minimumf %262, %261 : vector<3x128xf32>
    %264 = math.sqrt %229 : vector<3x128xf32>
    %265 = arith.mulf %263, %263 : vector<3x128xf32>
    %266 = vector.shape_cast %265 : vector<3x128xf32> to vector<1x3x128xf32>
    %267 = vector.broadcast %266 : vector<1x3x128xf32> to vector<3x3x128xf32>
    %268 = arith.mulf %267, %94 : vector<3x3x128xf32>
    %269 = vector.extract_strided_slice %268 {offsets = [0, 0, 0], sizes = [3, 1, 128], strides = [1, 1, 1]} : vector<3x3x128xf32> to vector<3x1x128xf32>
    %270 = vector.shape_cast %269 : vector<3x1x128xf32> to vector<3x128xf32>
    %271 = vector.extract_strided_slice %268 {offsets = [0, 1, 0], sizes = [3, 1, 128], strides = [1, 1, 1]} : vector<3x3x128xf32> to vector<3x1x128xf32>
    %272 = vector.shape_cast %271 : vector<3x1x128xf32> to vector<3x128xf32>
    %273 = arith.addf %270, %272 : vector<3x128xf32>
    %274 = vector.extract_strided_slice %268 {offsets = [0, 2, 0], sizes = [3, 1, 128], strides = [1, 1, 1]} : vector<3x3x128xf32> to vector<3x1x128xf32>
    %275 = vector.shape_cast %274 : vector<3x1x128xf32> to vector<3x128xf32>
    %276 = arith.addf %273, %275 : vector<3x128xf32>
    %cst_37 = arith.constant 1.000000e+00 : f32
    %277 = vector.broadcast %cst_37 : f32 to vector<3x128xf32>
    %278 = arith.addf %276, %277 : vector<3x128xf32>
    %279 = tpu.reciprocal %278 {approx = true} : vector<3x128xf32> -> vector<3x128xf32>
    %cst_38 = arith.constant 0.707106769 : f32
    %280 = vector.broadcast %cst_38 : f32 to vector<3x128xf32>
    %281 = arith.mulf %280, %264 : vector<3x128xf32>
    %282 = arith.mulf %281, %263 : vector<3x128xf32>
    %283 = arith.mulf %282, %101 : vector<3x128xf32>
    %284 = arith.mulf %283, %279 : vector<3x128xf32>
    %cst_39 = arith.constant 0.707106769 : f32
    %285 = vector.broadcast %cst_39 : f32 to vector<3x128xf32>
    %286 = arith.mulf %285, %264 : vector<3x128xf32>
    %287 = arith.mulf %286, %263 : vector<3x128xf32>
    %288 = arith.mulf %287, %108 : vector<3x128xf32>
    %289 = arith.mulf %288, %279 : vector<3x128xf32>
    %290 = arith.mulf %263, %263 : vector<3x128xf32>
    %291 = arith.mulf %290, %115 : vector<3x128xf32>
    %292 = arith.subf %276, %291 : vector<3x128xf32>
    %cst_40 = arith.constant 1.000000e+00 : f32
    %293 = vector.broadcast %cst_40 : f32 to vector<3x128xf32>
    %294 = arith.addf %292, %293 : vector<3x128xf32>
    %295 = arith.divf %291, %294 : vector<3x128xf32>
    %cst_41 = arith.constant 1.000000e+00 : f32
    %296 = vector.broadcast %cst_41 : f32 to vector<3x128xf32>
    %297 = arith.addf %296, %295 : vector<3x128xf32>
    %298 = math.log %297 : vector<3x128xf32>
    %cst_42 = arith.constant 1.44269502 : f32
    %299 = vector.broadcast %cst_42 : f32 to vector<3x128xf32>
    %300 = arith.mulf %298, %299 : vector<3x128xf32>
    %301 = tpu.concatenate %263, %284, %289, %227, %300 in 0 : vector<3x128xf32>, vector<3x128xf32>, vector<3x128xf32>, vector<3x128xf32>, vector<3x128xf32> -> vector<15x128xf32>
    %c1 = arith.constant 1 : index
    %c0_43 = arith.constant 0 : index
    %c0_44 = arith.constant 0 : index
    %302 = vector.load %arg8[%c1, %c0_43, %c0_44] : memref<3x15x128xf32, #tpu.memory_space<vmem>>, vector<1x15x128xf32>
    %303 = vector.shape_cast %302 : vector<1x15x128xf32> to vector<15x128xf32>
    %304 = vector.shape_cast %301 : vector<15x128xf32> to vector<1x15x128xf32>
    tpu.vector_store %arg8[%c1, %c0_43, %c0_44], %304 {strides = array<i32>} : memref<3x15x128xf32, #tpu.memory_space<vmem>>, vector<1x15x128xf32>,
    %305 = arith.mulf %263, %263 : vector<3x128xf32>
    %306 = arith.mulf %305, %115 : vector<3x128xf32>
    %307 = vector.shape_cast %305 : vector<3x128xf32> to vector<1x3x128xf32>
    %308 = vector.broadcast %307 : vector<1x3x128xf32> to vector<3x3x128xf32>
    %309 = arith.mulf %308, %94 : vector<3x3x128xf32>
    %310 = vector.extract_strided_slice %309 {offsets = [0, 0, 0], sizes = [3, 1, 128], strides = [1, 1, 1]} : vector<3x3x128xf32> to vector<3x1x128xf32>
    %311 = vector.shape_cast %310 : vector<3x1x128xf32> to vector<3x128xf32>
    %312 = vector.extract_strided_slice %309 {offsets = [0, 1, 0], sizes = [3, 1, 128], strides = [1, 1, 1]} : vector<3x3x128xf32> to vector<3x1x128xf32>
    %313 = vector.shape_cast %312 : vector<3x1x128xf32> to vector<3x128xf32>
    %314 = arith.addf %311, %313 : vector<3x128xf32>
    %315 = vector.extract_strided_slice %309 {offsets = [0, 2, 0], sizes = [3, 1, 128], strides = [1, 1, 1]} : vector<3x3x128xf32> to vector<3x1x128xf32>
    %316 = vector.shape_cast %315 : vector<3x1x128xf32> to vector<3x128xf32>
    %317 = arith.addf %314, %316 : vector<3x128xf32>
    %318 = arith.subf %317, %306 : vector<3x128xf32>
    %cst_45 = arith.constant 1.000000e+00 : f32
    %319 = vector.broadcast %cst_45 : f32 to vector<3x128xf32>
    %320 = arith.addf %318, %319 : vector<3x128xf32>
    %321 = arith.divf %306, %320 : vector<3x128xf32>
    %cst_46 = arith.constant 1.000000e+00 : f32
    %322 = vector.broadcast %cst_46 : f32 to vector<3x128xf32>
    %323 = arith.addf %322, %321 : vector<3x128xf32>
    %324 = arith.mulf %323, %306 : vector<3x128xf32>
    %325 = math.sqrt %324 : vector<3x128xf32>
    %cst_47 = arith.constant 1.000000e+00 : f32
    %326 = vector.broadcast %cst_47 : f32 to vector<3x128xf32>
    %327 = arith.addf %317, %326 : vector<3x128xf32>
    %328 = arith.divf %325, %327 : vector<3x128xf32>
    %cst_48 = arith.constant 0.707106769 : f32
    %329 = vector.broadcast %cst_48 : f32 to vector<3x128xf32>
    %330 = arith.mulf %328, %329 : vector<3x128xf32>
    %331 = arith.mulf %330, %330 : vector<3x128xf32>
    %332 = vector.extract_strided_slice %331 {offsets = [0, 0], sizes = [1, 128], strides = [1, 1]} : vector<3x128xf32> to vector<1x128xf32>
    %333 = vector.extract_strided_slice %94 {offsets = [0, 0, 0], sizes = [1, 3, 128], strides = [1, 1, 1]} : vector<3x3x128xf32> to vector<1x3x128xf32>
    %334 = vector.shape_cast %333 : vector<1x3x128xf32> to vector<3x128xf32>
    %335 = vector.broadcast %332 : vector<1x128xf32> to vector<3x128xf32>
    %336 = arith.mulf %335, %334 : vector<3x128xf32>
    %337 = vector.extract_strided_slice %331 {offsets = [1, 0], sizes = [1, 128], strides = [1, 1]} : vector<3x128xf32> to vector<1x128xf32>
    %338 = vector.extract_strided_slice %94 {offsets = [1, 0, 0], sizes = [1, 3, 128], strides = [1, 1, 1]} : vector<3x3x128xf32> to vector<1x3x128xf32>
    %339 = vector.shape_cast %338 : vector<1x3x128xf32> to vector<3x128xf32>
    %340 = vector.broadcast %337 : vector<1x128xf32> to vector<3x128xf32>
    %341 = arith.mulf %340, %339 : vector<3x128xf32>
    %342 = arith.addf %336, %341 : vector<3x128xf32>
    %343 = vector.extract_strided_slice %331 {offsets = [2, 0], sizes = [1, 128], strides = [1, 1]} : vector<3x128xf32> to vector<1x128xf32>
    %344 = vector.extract_strided_slice %94 {offsets = [2, 0, 0], sizes = [1, 3, 128], strides = [1, 1, 1]} : vector<3x3x128xf32> to vector<1x3x128xf32>
    %345 = vector.shape_cast %344 : vector<1x3x128xf32> to vector<3x128xf32>
    %346 = vector.broadcast %343 : vector<1x128xf32> to vector<3x128xf32>
    %347 = arith.mulf %346, %345 : vector<3x128xf32>
    %348 = arith.addf %342, %347 : vector<3x128xf32>
    %349 = arith.mulf %323, %331 : vector<3x128xf32>
    %350 = arith.mulf %349, %115 : vector<3x128xf32>
    %351 = arith.mulf %348, %348 : vector<3x128xf32>
    %cst_49 = arith.constant 2.000000e+00 : f32
    %352 = vector.broadcast %cst_49 : f32 to vector<3x128xf32>
    %353 = arith.mulf %352, %351 : vector<3x128xf32>
    %354 = arith.divf %350, %353 : vector<3x128xf32>
    %355 = math.sqrt %354 : vector<3x128xf32>
    %cst_50 = arith.constant 1.000000e+00 : f32
    %356 = vector.broadcast %cst_50 : f32 to vector<3x128xf32>
    %357 = arith.minimumf %356, %355 : vector<3x128xf32>
    %358 = math.sqrt %323 : vector<3x128xf32>
    %359 = arith.mulf %357, %357 : vector<3x128xf32>
    %360 = vector.shape_cast %359 : vector<3x128xf32> to vector<1x3x128xf32>
    %361 = vector.broadcast %360 : vector<1x3x128xf32> to vector<3x3x128xf32>
    %362 = arith.mulf %361, %94 : vector<3x3x128xf32>
    %363 = vector.extract_strided_slice %362 {offsets = [0, 0, 0], sizes = [3, 1, 128], strides = [1, 1, 1]} : vector<3x3x128xf32> to vector<3x1x128xf32>
    %364 = vector.shape_cast %363 : vector<3x1x128xf32> to vector<3x128xf32>
    %365 = vector.extract_strided_slice %362 {offsets = [0, 1, 0], sizes = [3, 1, 128], strides = [1, 1, 1]} : vector<3x3x128xf32> to vector<3x1x128xf32>
    %366 = vector.shape_cast %365 : vector<3x1x128xf32> to vector<3x128xf32>
    %367 = arith.addf %364, %366 : vector<3x128xf32>
    %368 = vector.extract_strided_slice %362 {offsets = [0, 2, 0], sizes = [3, 1, 128], strides = [1, 1, 1]} : vector<3x3x128xf32> to vector<3x1x128xf32>
    %369 = vector.shape_cast %368 : vector<3x1x128xf32> to vector<3x128xf32>
    %370 = arith.addf %367, %369 : vector<3x128xf32>
    %cst_51 = arith.constant 1.000000e+00 : f32
    %371 = vector.broadcast %cst_51 : f32 to vector<3x128xf32>
    %372 = arith.addf %370, %371 : vector<3x128xf32>
    %373 = tpu.reciprocal %372 {approx = true} : vector<3x128xf32> -> vector<3x128xf32>
    %cst_52 = arith.constant 0.707106769 : f32
    %374 = vector.broadcast %cst_52 : f32 to vector<3x128xf32>
    %375 = arith.mulf %374, %358 : vector<3x128xf32>
    %376 = arith.mulf %375, %357 : vector<3x128xf32>
    %377 = arith.mulf %376, %101 : vector<3x128xf32>
    %378 = arith.mulf %377, %373 : vector<3x128xf32>
    %cst_53 = arith.constant 0.707106769 : f32
    %379 = vector.broadcast %cst_53 : f32 to vector<3x128xf32>
    %380 = arith.mulf %379, %358 : vector<3x128xf32>
    %381 = arith.mulf %380, %357 : vector<3x128xf32>
    %382 = arith.mulf %381, %108 : vector<3x128xf32>
    %383 = arith.mulf %382, %373 : vector<3x128xf32>
    %384 = arith.mulf %357, %357 : vector<3x128xf32>
    %385 = arith.mulf %384, %115 : vector<3x128xf32>
    %386 = arith.subf %370, %385 : vector<3x128xf32>
    %cst_54 = arith.constant 1.000000e+00 : f32
    %387 = vector.broadcast %cst_54 : f32 to vector<3x128xf32>
    %388 = arith.addf %386, %387 : vector<3x128xf32>
    %389 = arith.divf %385, %388 : vector<3x128xf32>
    %cst_55 = arith.constant 1.000000e+00 : f32
    %390 = vector.broadcast %cst_55 : f32 to vector<3x128xf32>
    %391 = arith.addf %390, %389 : vector<3x128xf32>
    %392 = math.log %391 : vector<3x128xf32>
    %cst_56 = arith.constant 1.44269502 : f32
    %393 = vector.broadcast %cst_56 : f32 to vector<3x128xf32>
    %394 = arith.mulf %392, %393 : vector<3x128xf32>
    %395 = tpu.concatenate %357, %378, %383, %321, %394 in 0 : vector<3x128xf32>, vector<3x128xf32>, vector<3x128xf32>, vector<3x128xf32>, vector<3x128xf32> -> vector<15x128xf32>
    %c2 = arith.constant 2 : index
    %c0_57 = arith.constant 0 : index
    %c0_58 = arith.constant 0 : index
    %396 = vector.load %arg8[%c2, %c0_57, %c0_58] : memref<3x15x128xf32, #tpu.memory_space<vmem>>, vector<1x15x128xf32>
    %397 = vector.shape_cast %396 : vector<1x15x128xf32> to vector<15x128xf32>
    %398 = vector.shape_cast %395 : vector<15x128xf32> to vector<1x15x128xf32>
    tpu.vector_store %arg8[%c2, %c0_57, %c0_58], %398 {strides = array<i32>} : memref<3x15x128xf32, #tpu.memory_space<vmem>>, vector<1x15x128xf32>,
    return
  }
  func.func @transform_0(%arg0: i32) -> (i32, i32) {
    %c0_i32 = arith.constant 0 : i32
    %c0_i32_0 = arith.constant 0 : i32
    return %c0_i32, %arg0 : i32, i32
  }
  func.func @transform_1(%arg0: i32) -> (i32, i32) {
    %c0_i32 = arith.constant 0 : i32
    %c0_i32_0 = arith.constant 0 : i32
    return %c0_i32, %arg0 : i32, i32
  }
  func.func @transform_2(%arg0: i32) -> (i32, i32) {
    %c0_i32 = arith.constant 0 : i32
    %c0_i32_0 = arith.constant 0 : i32
    return %c0_i32, %arg0 : i32, i32
  }
  func.func @transform_3(%arg0: i32) -> (i32, i32, i32) {
    %c0_i32 = arith.constant 0 : i32
    %c0_i32_0 = arith.constant 0 : i32
    %c0_i32_1 = arith.constant 0 : i32
    return %c0_i32, %c0_i32_0, %arg0 : i32, i32, i32
  }
  func.func @transform_4(%arg0: i32) -> (i32, i32, i32) {
    %c0_i32 = arith.constant 0 : i32
    %c0_i32_0 = arith.constant 0 : i32
    %c0_i32_1 = arith.constant 0 : i32
    return %c0_i32, %c0_i32_0, %arg0 : i32, i32, i32
  }
  func.func @transform_5(%arg0: i32) -> (i32, i32, i32) {
    %c0_i32 = arith.constant 0 : i32
    %c0_i32_0 = arith.constant 0 : i32
    %c0_i32_1 = arith.constant 0 : i32
    return %c0_i32, %c0_i32_0, %arg0 : i32, i32, i32
  }
  func.func @transform_6(%arg0: i32) -> (i32, i32, i32) {
    %c0_i32 = arith.constant 0 : i32
    %c0_i32_0 = arith.constant 0 : i32
    %c0_i32_1 = arith.constant 0 : i32
    return %c0_i32, %c0_i32_0, %arg0 : i32, i32, i32
  }
  func.func @transform_7(%arg0: i32) -> (i32, i32, i32) {
    %c0_i32 = arith.constant 0 : i32
    %c0_i32_0 = arith.constant 0 : i32
    %c0_i32_1 = arith.constant 0 : i32
    return %c0_i32, %c0_i32_0, %arg0 : i32, i32, i32
  }
}

</mosaic_0001>

<bundles_post_ra>
// kernel: tpu_custom_call.1
= control target key start
LH: loop header
LB: loop body
LE: loop exit
PB: predicated region body
PF: predicated region fallthrough
CT: control target
= control target key end

     0   :  { %12 = vsyncpa [#allocation3], 0  ;;  %v37_v0 = vlaneseq  ;;  %v888_v5 = vmov 1966171168   ;;  %vm272_vm0 = vcmask 1040384   ;;  %vm274_vm1 = vcmask 1041408   ;;  %s1168_s0 = inlined_call_operand.vmem [shape: f32[3,128], index: 0, kind: input, shape index: {}]   ;;  %s1169_s1 = inlined_call_operand.vmem [shape: f32[2,128], index: 1, kind: input, shape index: {}]   ;;  %s1170_s2 = inlined_call_operand.vmem [shape: f32[2,128], index: 2, kind: input, shape index: {}]   ;;  %s1171_s3 = inlined_call_operand.vmem [shape: f32[2,3,128], index: 3, kind: input, shape index: {}]   ;;  %s1172_s4 = inlined_call_operand.vmem [shape: f32[2,3,128], index: 4, kind: input, shape index: {}]   ;;  %s1173_s5 = inlined_call_operand.vmem [shape: f32[2,3,128], index: 5, kind: input, shape index: {}]   ;;  %s1174_s6 = inlined_call_operand.vmem [shape: f32[2,3,128], index: 6, kind: input, shape index: {}]   ;;  %s1175_s7 = inlined_call_operand.hbm [shape: f32[3,15,128], index: 7, kind: output, shape index: {}]  }
   0x1   :  { %v27_v2 = vld [vmem:[%s1169_s1] sm:$0x3]  ;;  %v53_v6 = vunpack.c.l.s4 %v888_v5  ;;  %v34_v10 = vld [vmem:[%s1173_s5 + $0x4] sm:$0x7]  ;;  %vm323_vm2 = vcmask 1041409   ;;  %vm326_vm3 = vcmask 1042434  }
   0x2   :  { %v932_v1 = vshrl.u32 %v37_v0, 7  ;;  %v28_v3 = vld [vmem:[%s1170_s2] sm:$0x3]  ;;  %v36_v11 = vld [vmem:[%s1174_s6 + $0x4] sm:$0x7]  ;;  %vm477_vm10 = vcmask 1042432  }
   0x3   :  { %v33_v8 = vld [vmem:[%s1173_s5] sm:$0x7]  ;;  %v54_v14 = vunpack.c.0.s8 %v53_v6  ;;  %vm479_vm11 = vcmask 1045504   ;;  %vm482_vm14 = vcmask 1043456  }
   0x4   :  { %v941_v4 = vsub.s32 0, %v932_v1  ;;  %v944_v7 = vsub.s32 1, %v932_v1  ;;  %v35_v9 = vld [vmem:[%s1174_s6] sm:$0x7] }
   0x5   :  { %v57_v21 = vsub.s32 %v54_v14, %v932_v1  ;;  %v29_v45 = vld [vmem:[%s1171_s3] sm:$0x7] }
   0x6   :  { %v40_v12 = vrot.slane %v27_v2, %v941_v4  ;;  %v45_v13 = vrot.slane %v28_v3, %v941_v4  ;;  %v150_v15 = vrot.slane %v27_v2, %v944_v7  ;;  %v155_v16 = vrot.slane %v28_v3, %v944_v7  ;;  %v31_v46 = vld [vmem:[%s1172_s4] sm:$0x7]  ;;  %v30_v2 = vld [vmem:[%s1171_s3 + $0x4] sm:$0x7] }
   0x7   :  { %v32_v3 = vld [vmem:[%s1172_s4 + $0x4] sm:$0x7] }
   0x8   :  { %v41_v17 = vmul.f32 %v40_v12, %v33_v8  ;;  %v46_v18 = vmul.f32 %v45_v13, %v35_v9  ;;  %v48_v19 = vmul.f32 %v45_v13, %v33_v8  ;;  %v49_v20 = vmul.f32 %v40_v12, %v35_v9 }
   0x9   :  { %v151_v22 = vmul.f32 %v150_v15, %v34_v10  ;;  %v156_v23 = vmul.f32 %v155_v16, %v36_v11  ;;  %v158_v27 = vmul.f32 %v155_v16, %v34_v10  ;;  %v159_v28 = vmul.f32 %v150_v15, %v36_v11 }
   0xa   :  { %v47_v24 = vsub.f32 %v41_v17, %v46_v18  ;;  %v50_v25 = vadd.f32 %v49_v20, %v48_v19 }
   0xb   :  { %v157_v26 = vsub.f32 %v151_v22, %v156_v23  ;;  %v160_v36 = vadd.f32 %v159_v28, %v158_v27 }
   0xc   :  { %v58_v29 = vrot.slane %v47_v24, %v57_v21  ;;  %v100_v30 = vrot.slane %v50_v25, %v57_v21 }
   0xd   :  { %v168_v31 = vrot.slane %v157_v26, %v57_v21  ;;  %v210_v55 = vrot.slane %v160_v36, %v57_v21 }
   0xe   :  { %v59_v32 = vcombine.high %v58_v29, %v58_v29  ;;  %v66_v33 = vrot.slane %v58_v29, %v57_v21  ;;  %v101_v34 = vcombine.high %v100_v30, %v100_v30  ;;  %v108_v35 = vrot.slane %v100_v30, %v57_v21 }
   0xf   :  { %v169_v37 = vcombine.high %v168_v31, %v168_v31  ;;  %v176_v38 = vrot.slane %v168_v31, %v57_v21  ;;  %v211_v8 = vcombine.high %v210_v55, %v210_v55  ;;  %v218_v9 = vrot.slane %v210_v55, %v57_v21 }
  0x10   :  { %v73_v39 = vrot.slane %v59_v32, %v57_v21  ;;  %v74_v40 = vcombine.high %v66_v33, %v66_v33  ;;  %v78_v41 = vrot.slane %v66_v33, %v941_v4  ;;  %v115_v42 = vrot.slane %v101_v34, %v57_v21 }
  0x11   :  { %v116_v43 = vcombine.high %v108_v35, %v108_v35  ;;  %v120_v44 = vrot.slane %v108_v35, %v941_v4  ;;  %v183_v50 = vrot.slane %v169_v37, %v57_v21  ;;  %v184_v51 = vcombine.high %v176_v38, %v176_v38 }
  0x12   :  { %v82_v47 = vrot.slane %v73_v39, %v941_v4  ;;  %v124_v48 = vrot.slane %v115_v42, %v941_v4  ;;  %v86_v49 = vrot.slane %v74_v40, %v941_v4  ;;  %v90_v52 = vmul.f32 %v78_v41, %v29_v45 }
  0x13   :  { %v128_v53 = vrot.slane %v116_v43, %v941_v4  ;;  %v132_v54 = vmul.f32 %v120_v44, %v31_v46  ;;  %v138_v58 = vmul.f32 %v78_v41, %v31_v46  ;;  %v141_v59 = vmul.f32 %v120_v44, %v29_v45  ;;  %v280_v41 = vld [vmem:[%s1168_s0] sm:$0x7]  ;;  %s889_s0 = smov [#allocation2]  }
  0x14   :  { %v91_v56 = vmul.f32 %v82_v47, %v29_v45  ;;  %v133_v57 = vmul.f32 %v124_v48, %v31_v46  ;;  %v188_v60 = vrot.slane %v176_v38, %v941_v4  ;;  %v92_v61 = vmul.f32 %v86_v49, %v29_v45  ;;  %s789_s17 = sshll.u32 %s889_s0, 4  ;;  %s790_s17 = int_to_ptr.vmem [resolvable:$true] %s789_s17 }
  0x15   :  { %v139_v62 = vmul.f32 %v82_v47, %v31_v46  ;;  %v192_v63 = vrot.slane %v183_v50, %v941_v4  ;;  %v196_v0 = vrot.slane %v184_v51, %v941_v4  ;;  %v134_v5 = vmul.f32 %v128_v53, %v31_v46  ;;  %s866_s18 = scalar_lea.vmem %s790_s17, 768  ;;  %p871_p1 = scmp.lt.s32.totalorder %s790_s17, %s790_s17 }
  0x16   :  { %v135_v6 = vsub.f32 %v90_v52, %v132_v54  ;;  %v136_v10 = vsub.f32 %v91_v56, %v133_v57  ;;  %v140_v11 = vmul.f32 %v86_v49, %v31_v46  ;;  %v142_v12 = vmul.f32 %v124_v48, %v29_v45  ;;  %p867_p0 = scmp.ne.s32.totalorder %s790_s17, %s866_s18  ;;  %p872_p2 = scmp.lt.s32.totalorder %s866_s18, %s866_s18 }
  0x17   :  { %v143_v13 = vmul.f32 %v128_v53, %v29_v45  ;;  %v200_v14 = vmul.f32 %v188_v60, %v30_v2  ;;  %v225_v15 = vrot.slane %v211_v8, %v57_v21  ;;  %v226_v16 = vcombine.high %v218_v9, %v218_v9 }
  0x18   :  { %v230_v17 = vrot.slane %v218_v9, %v941_v4  ;;  %v201_v18 = vmul.f32 %v192_v63, %v30_v2  ;;  %v202_v19 = vmul.f32 %v196_v0, %v30_v2  ;;  %v248_v20 = vmul.f32 %v188_v60, %v32_v3  ;;  %p873_p3 = por %p872_p2, %p871_p1 }
  0x19   :  { %v249_v22 = vmul.f32 %v192_v63, %v32_v3  ;;  %v234_v23 = vrot.slane %v225_v15, %v941_v4  ;;  %v238_v24 = vrot.slane %v226_v16, %v941_v4  ;;  %v137_v27 = vsub.f32 %v92_v61, %v134_v5 }
  0x1a   :  { %v242_v25 = vmul.f32 %v230_v17, %v32_v3  ;;  %v251_v26 = vmul.f32 %v230_v17, %v30_v2  ;;  %v144_v28 = vadd.f32 %v141_v59, %v138_v58  ;;  %v145_v29 = vadd.f32 %v142_v12, %v139_v62  ;;  %p874_p4 = pnand %p873_p3, %p867_p0 }
  0x1b   :  { %v250_v30 = vmul.f32 %v196_v0, %v32_v3  ;;  %v243_v31 = vmul.f32 %v234_v23, %v32_v3  ;;  %v244_v32 = vmul.f32 %v238_v24, %v32_v3  ;;  %v252_v33 = vmul.f32 %v234_v23, %v30_v2 }
  0x1c   :  { %v245_v21 = vsub.f32 %v200_v14, %v242_v25  ;;  %v146_v34 = vadd.f32 %v143_v13, %v140_v11  ;;  %v253_v35 = vmul.f32 %v238_v24, %v30_v2  ;;  %v254_v36 = vadd.f32 %v251_v26, %v248_v20 }
  0x1d   :  { %v246_v37 = vsub.f32 %v201_v18, %v243_v31  ;;  %v247_v38 = vsub.f32 %v202_v19, %v244_v32  ;;  %v255_v39 = vadd.f32 %v252_v33, %v249_v22  ;;  %v281_v50 = vmul.f32 %v280_v41, %v280_v41 }
  0x1e   :  { %v257_v40 = vadd.f32 %v245_v21, %v135_v6  ;;  %v256_v42 = vadd.f32 %v253_v35, %v250_v30  ;;  %v260_v43 = vadd.f32 %v254_v36, %v144_v28 }
  0x1f   :  { %v258_v44 = vadd.f32 %v246_v37, %v136_v10  ;;  %v259_v45 = vadd.f32 %v247_v38, %v137_v27  ;;  %v261_v46 = vadd.f32 %v255_v39, %v145_v29 }
  0x20   :  { %v263_v47 = vmul.f32 %v257_v40, %v257_v40  ;;  %v262_v48 = vadd.f32 %v256_v42, %v146_v34  ;;  %v266_v49 = vmul.f32 %v260_v43, %v260_v43 }
  0x21   :  { %v264_v51 = vmul.f32 %v258_v44, %v258_v44  ;;  %v265_v52 = vmul.f32 %v259_v45, %v259_v45  ;;  %v267_v53 = vmul.f32 %v261_v46, %v261_v46  ;;  %v273_v54 = vsel %vm272_vm0, %v257_v40, %v258_v44 }
  0x22   :  { %v268_v55 = vmul.f32 %v262_v48, %v262_v48  ;;  %v991_v56 = vadd.f32 %v266_v49, %v263_v47  ;;  %v994_v57 = vsel %vm274_vm1, %v273_v54, %v259_v45  ;;  %v276_v58 = vsel %vm272_vm0, %v260_v43, %v261_v46 }
  0x23   :  { %v997_v59 = vadd.f32 %v267_v53, %v264_v51  ;;  %v1000_v60 = vsel %vm274_vm1, %v276_v58, %v262_v48 }
  0x24   :  { %v1002_v61 = vadd.f32 %v268_v55, %v265_v52  ;;  %v283_v62 = vmul.f32 %v281_v50, %v991_v56 }
  0x25   :  { %v278_v63 = vsel %vm272_vm0, %v991_v56, %v997_v59  ;;  %v284_v0 = vmul.f32 %v281_v50, %v997_v59 }
  0x26   :  { %v1011_v2 = vsel %vm274_vm1, %v278_v63, %v1002_v61  ;;  %v285_v3 = vmul.f32 %v281_v50, %v1002_v61  ;;  %v289_v5 = vrot.slane %v283_v62, 1  ;;  %v298_v6 = vrot.slane %v283_v62, 2 }
  0x27   :  { %v282_v8 = vmul.f32 %v281_v50, %v1011_v2  ;;  %v290_v9 = vrot.slane %v284_v0, 1  ;;  %v299_v10 = vrot.slane %v284_v0, 2  ;;  %v1026_v50 = vsub.s32 2, %v932_v1 }
  0x28   :  { %v291_v11 = vrot.slane %v285_v3, 1  ;;  %v295_v12 = vadd.f32 %v289_v5, %v283_v62  ;;  %v300_v13 = vrot.slane %v285_v3, 2 }
  0x29   :  { %v296_v14 = vadd.f32 %v290_v9, %v284_v0  ;;  %v308_v15 = vrot.slane %v282_v8, 1  ;;  %v309_v18 = vrot.slane %v282_v8, 2 }
  0x2a   :  { %v297_v16 = vadd.f32 %v291_v11, %v285_v3  ;;  %v304_v17 = vadd.f32 %v298_v6, %v295_v12 }
  0x2b   :  { %v305_v19 = vadd.f32 %v299_v10, %v296_v14 }
  0x2c   :  { %v306_v20 = vadd.f32 %v300_v13, %v297_v16  ;;  %v313_v22 = vsub.f32 %v304_v17, %v282_v8  ;;  %v340_v33 = vadd.f32 1.0, %v304_v17 }
  0x2d   :  { %v314_v23 = vsub.f32 %v305_v19, %v308_v15  ;;  %v341_v32 = vadd.f32 1.0, %v305_v19 }
  0x2e   :  { %v315_v24 = vsub.f32 %v306_v20, %v309_v18  ;;  %v316_v25 = vadd.f32 1.0, %v313_v22  ;;  %v342_v21 = vadd.f32 1.0, %v306_v20 }
  0x2f   :  { %v317_v26 = vadd.f32 1.0, %v314_v23  ;;  %v346_v34 = vrot.slane %v341_v32, 7 }
  0x30   :  { %v318_v27 = vadd.f32 1.0, %v315_v24  ;;  %v348_v37 = vrot.slane %v342_v21, 6 }
  0x31   :  { %v322_v28 = vrot.slane %v317_v26, 7  ;;  %v347_v39 = vsel %vm323_vm2, %v346_v34, %v340_v33 }
  0x32   :  { %v325_v29 = vrot.slane %v318_v27, 6  ;;  %v349_v41 = vsel %vm326_vm3, %v348_v37, %v347_v39 }
  0x33   :  { %v324_v30 = vsel %vm323_vm2, %v322_v28, %v316_v25 }
  0x34   :  { %v327_v31 = vsel %vm326_vm3, %v325_v29, %v324_v30 }
  0x35   :  { %804 = vrcp.f32 %v327_v31 }
  0x42   :  { %v805_v35 = vpop.eup %804 }
  0x43   :  { %v1017_v36 = vmul.f32 %v805_v35, %v282_v8 }
  0x45   :  { %v1020_v38 = vadd.f32 1.0, %v1017_v36 }
  0x47   :  { %v332_v40 = vmul.f32 %v1020_v38, %v282_v8  ;;  %vm388_vm8 = vcmp.eq.f32.partialorder %v1020_v38, inf  ;;  %vm390_vm9 = vcmp.eq.f32.partialorder %v1020_v38, 0.0 }
  0x49   :  { %806 = vrsqrt.f32 %v332_v40  ;;  %vm335_vm4 = vcmp.eq.f32.partialorder %v332_v40, inf  ;;  %v338_v43 = vand.u32 2147483648, %v332_v40  ;;  %vm337_vm5 = vcmp.eq.f32.partialorder %v332_v40, 0.0 }
  0x4a   :  { %808 = vrcp.f32 %v349_v41 }
  0x56   :  { %v807_v42 = vpop.eup %806 }
  0x57   :  { %v334_v44 = vmul.f32 %v807_v42, %v332_v40  ;;  %v809_v45 = vpop.eup %808 }
  0x59   :  { %v336_v46 = vsel %vm335_vm4, %v332_v40, %v334_v44 }
  0x5a   :  { %v339_v47 = vsel %vm337_vm5, %v338_v43, %v336_v46 }
  0x5b   :  { %v352_v48 = vmul.f32 %v809_v45, %v339_v47  ;;  %v391_v45 = vand.u32 2147483648, %v1020_v38 }
  0x5d   :  { %v353_v49 = vmul.f32 0.70710677, %v352_v48 }
  0x5f   :  { %v354_v51 = vmul.f32 %v353_v49, %v353_v49 }
  0x61   :  { %v358_v52 = vrot.slane %v354_v51, %v941_v4  ;;  %v363_v53 = vrot.slane %v354_v51, %v944_v7  ;;  %v369_v54 = vrot.slane %v354_v51, %v1026_v50  ;;  %v372_v1 = vmul.f32 %v354_v51, %v1020_v38 }
  0x63   :  { %v359_v55 = vmul.f32 %v358_v52, %v991_v56  ;;  %v364_v58 = vmul.f32 %v363_v53, %v997_v59  ;;  %v370_v62 = vmul.f32 %v369_v54, %v1002_v61  ;;  %v373_v6 = vmul.f32 %v372_v1, %v1011_v2 }
  0x65   :  { %v365_v63 = vadd.f32 %v364_v58, %v359_v55 }
  0x67   :  { %v371_v0 = vadd.f32 %v370_v62, %v365_v63 }
  0x69   :  { %v374_v3 = vmul.f32 %v371_v0, %v371_v0 }
  0x6b   :  { %v375_v5 = vmul.f32 2.0, %v374_v3 }
  0x6d   :  { %810 = vrcp.f32 %v375_v5 }
  0x7a   :  { %v811_v8 = vpop.eup %810 }
  0x7b   :  { %v377_v9 = vmul.f32 %v811_v8, %v373_v6 }
  0x7d   :  { %812 = vrsqrt.f32 %v377_v9  ;;  %vm380_vm6 = vcmp.eq.f32.partialorder %v377_v9, inf  ;;  %v383_v11 = vand.u32 2147483648, %v377_v9  ;;  %vm382_vm7 = vcmp.eq.f32.partialorder %v377_v9, 0.0 }
  0x7e   :  { %814 = vrsqrt.f32 %v1020_v38 }
  0x8a   :  { %v813_v10 = vpop.eup %812 }
  0x8b   :  { %v379_v12 = vmul.f32 %v813_v10, %v377_v9  ;;  %v815_v26 = vpop.eup %814 }
  0x8c   :  { %v387_v33 = vmul.f32 %v815_v26, %v1020_v38 }
  0x8d   :  { %v381_v13 = vsel %vm380_vm6, %v377_v9, %v379_v12  ;;  %v472_v12 = vrot.slane %v1017_v36, 7 }
  0x8e   :  { %v384_v14 = vsel %vm382_vm7, %v383_v11, %v381_v13  ;;  %v389_v44 = vsel %vm388_vm8, %v1020_v38, %v387_v33 }
  0x8f   :  { %v1037_v15 = vmin.f32 %v384_v14, 1.0  ;;  %v392_v53 = vsel %vm390_vm9, %v391_v45, %v389_v44 }
  0x90   :  { %v424_v58 = vmul.f32 0.70710677, %v392_v53 }
  0x91   :  { %v393_v16 = vmul.f32 %v1037_v15, %v1037_v15 }
  0x92   :  { %v425_v62 = vmul.f32 %v424_v58, %v1037_v15 }
  0x93   :  { %v394_v17 = vmul.f32 %v393_v16, %v991_v56  ;;  %v395_v18 = vmul.f32 %v393_v16, %v997_v59  ;;  %v396_v19 = vmul.f32 %v393_v16, %v1002_v61  ;;  %v1045_v20 = vmul.f32 %v393_v16, %v1011_v2 }
  0x94   :  { %v426_v3 = vmul.f32 %v425_v62, %v994_v57  ;;  %v436_v1 = vmul.f32 %v425_v62, %v1000_v60 }
  0x95   :  { %v400_v22 = vrot.slane %v394_v17, 1  ;;  %v401_v23 = vrot.slane %v395_v18, 1  ;;  %v402_v24 = vrot.slane %v396_v19, 1  ;;  %v409_v25 = vrot.slane %v394_v17, 2 }
  0x96   :  { %v410_v27 = vrot.slane %v395_v18, 2  ;;  %v411_v28 = vrot.slane %v396_v19, 2  ;;  %v440_v32 = vrot.slane %v1045_v20, 1  ;;  %v441_v21 = vrot.slane %v1045_v20, 2 }
  0x97   :  { %v406_v29 = vadd.f32 %v400_v22, %v394_v17  ;;  %v407_v30 = vadd.f32 %v401_v23, %v395_v18  ;;  %v408_v31 = vadd.f32 %v402_v24, %v396_v19 }
  0x99   :  { %v415_v34 = vadd.f32 %v409_v25, %v406_v29  ;;  %v416_v35 = vadd.f32 %v410_v27, %v407_v30  ;;  %v417_v37 = vadd.f32 %v411_v28, %v408_v31 }
  0x9b   :  { %v418_v39 = vadd.f32 1.0, %v415_v34  ;;  %v445_v40 = vsub.f32 %v415_v34, %v1045_v20  ;;  %v419_v41 = vadd.f32 1.0, %v416_v35  ;;  %v446_v42 = vsub.f32 %v416_v35, %v440_v32 }
  0x9c   :  { %v447_v43 = vsub.f32 %v417_v37, %v441_v21  ;;  %v420_v46 = vadd.f32 1.0, %v417_v37 }
  0x9d   :  { %816 = vrcp.f32 %v418_v39  ;;  %v448_v47 = vadd.f32 1.0, %v445_v40  ;;  %v449_v48 = vadd.f32 1.0, %v446_v42  ;;  %v497_v13 = vrot.slane %v419_v41, 7 }
  0x9e   :  { %818 = vrcp.f32 %v419_v41  ;;  %v450_v49 = vadd.f32 1.0, %v447_v43  ;;  %v499_v19 = vrot.slane %v420_v46, 6 }
  0x9f   :  { %820 = vrcp.f32 %v420_v46  ;;  %v454_v51 = vrot.slane %v449_v48, 7  ;;  %v498_v36 = vsel %vm323_vm2, %v497_v13, %v418_v39 }
  0xa0   :  { %v456_v52 = vrot.slane %v450_v49, 6  ;;  %v500_v27 = vsel %vm326_vm3, %v499_v19, %v498_v36 }
  0xa1   :  { %v455_v54 = vsel %vm323_vm2, %v454_v51, %v448_v47 }
  0xa2   :  { %v457_v55 = vsel %vm326_vm3, %v456_v52, %v455_v54 }
  0xa3   :  { %822 = vrcp.f32 %v457_v55 }
  0xaa   :  { %v817_v63 = vpop.eup %816 }
  0xab   :  { %v819_v38 = vpop.eup %818 }
  0xac   :  { %v821_v0 = vpop.eup %820  ;;  %v430_v5 = vrot.slane %v819_v38, 7 }
  0xad   :  { %v432_v6 = vrot.slane %v821_v0, 6 }
  0xae   :  { %v431_v8 = vsel %vm323_vm2, %v430_v5, %v817_v63 }
  0xaf   :  { %v433_v9 = vsel %vm326_vm3, %v432_v6, %v431_v8 }
  0xb0   :  { %v435_v10 = vmul.f32 %v433_v9, %v426_v3  ;;  %v437_v11 = vmul.f32 %v436_v1, %v433_v9  ;;  %v823_v14 = vpop.eup %822 }
  0xb1   :  { %v1064_v16 = vmul.f32 %v823_v14, %v1045_v20 }
  0xb2   :  { %v466_v17 = vrot.slane %v435_v10, 5  ;;  %v469_v18 = vrot.slane %v437_v11, 2 }
  0xb3   :  { %v1067_v22 = vadd.f32 1.0, %v1064_v16 }
  0xb4   :  { %v478_v23 = vsel %vm477_vm10, %v1037_v15, %v466_v17  ;;  %v481_v24 = vsel %vm272_vm0, %v469_v18, %v472_v12 }
  0xb5   :  { %v480_v25 = vsel %vm479_vm11, %v478_v23, %v469_v18  ;;  %824 = vlog2.f32 %v1067_v22  ;;  %v486_v26 = vmul.f32 %v1067_v22, %v1045_v20  ;;  %vm539_vm4 = vcmp.eq.f32.partialorder %v1067_v22, inf }
  0xb6   :  { %484 = vst [vmem:[#allocation2] sm:$0xff] %v480_v25  ;;  %vm541_vm5 = vcmp.eq.f32.partialorder %v1067_v22, 0.0 }
  0xb7   :  { %826 = vrsqrt.f32 %v486_v26  ;;  %vm489_vm12 = vcmp.eq.f32.partialorder %v486_v26, inf  ;;  %v492_v15 = vand.u32 2147483648, %v486_v26  ;;  %vm491_vm13 = vcmp.eq.f32.partialorder %v486_v26, 0.0 }
  0xb8   :  { %828 = vrcp.f32 %v500_v27 }
  0xc2   :  { %v825_v28 = vpop.eup %824 }
  0xc3   :  { %v463_v29 = vmul.f32 0.6931472, %v825_v28 }
  0xc4   :  { %v827_v30 = vpop.eup %826 }
  0xc5   :  { %v464_v31 = vmul.f32 1.442695, %v463_v29  ;;  %v488_v32 = vmul.f32 %v827_v30, %v486_v26  ;;  %v829_v21 = vpop.eup %828 }
  0xc7   :  { %v475_v33 = vrot.slane %v464_v31, 4  ;;  %v490_v34 = vsel %vm489_vm12, %v486_v26, %v488_v32 }
  0xc8   :  { %v493_v35 = vsel %vm491_vm13, %v492_v15, %v490_v34  ;;  %v542_v34 = vand.u32 2147483648, %v1067_v22 }
  0xc9   :  { %v483_v37 = vsel %vm482_vm14, %v481_v24, %v475_v33  ;;  %v503_v20 = vmul.f32 %v829_v21, %v493_v35 }
  0xca   :  { %485 = vst [vmem:[#allocation2 + $0x8] sm:$0x7f] %v483_v37 }
  0xcb   :  { %v504_v39 = vmul.f32 0.70710677, %v503_v20 }
  0xcd   :  { %v505_v40 = vmul.f32 %v504_v39, %v504_v39 }
  0xcf   :  { %v509_v41 = vrot.slane %v505_v40, %v941_v4  ;;  %v514_v42 = vrot.slane %v505_v40, %v944_v7  ;;  %v520_v43 = vrot.slane %v505_v40, %v1026_v50  ;;  %v523_v52 = vmul.f32 %v505_v40, %v1067_v22 }
  0xd1   :  { %v510_v44 = vmul.f32 %v509_v41, %v991_v56  ;;  %v515_v45 = vmul.f32 %v514_v42, %v997_v59  ;;  %v521_v46 = vmul.f32 %v520_v43, %v1002_v61  ;;  %v524_v53 = vmul.f32 %v523_v52, %v1011_v2 }
  0xd3   :  { %v516_v47 = vadd.f32 %v515_v45, %v510_v44 }
  0xd5   :  { %v522_v48 = vadd.f32 %v521_v46, %v516_v47 }
  0xd7   :  { %v525_v49 = vmul.f32 %v522_v48, %v522_v48 }
  0xd9   :  { %v526_v51 = vmul.f32 2.0, %v525_v49 }
  0xdb   :  { %830 = vrcp.f32 %v526_v51 }
  0xe8   :  { %v831_v54 = vpop.eup %830 }
  0xe9   :  { %v528_v55 = vmul.f32 %v831_v54, %v524_v53 }
  0xeb   :  { %832 = vrsqrt.f32 %v528_v55  ;;  %vm531_vm15 = vcmp.eq.f32.partialorder %v528_v55, inf  ;;  %v534_v62 = vand.u32 2147483648, %v528_v55  ;;  %vm533_vm1 = vcmp.eq.f32.partialorder %v528_v55, 0.0 }
  0xec   :  { %834 = vrsqrt.f32 %v1067_v22 }
  0xf8   :  { %v833_v58 = vpop.eup %832 }
  0xf9   :  { %v530_v63 = vmul.f32 %v833_v58, %v528_v55  ;;  %v835_v14 = vpop.eup %834 }
  0xfa   :  { %v538_v26 = vmul.f32 %v835_v14, %v1067_v22 }
  0xfb   :  { %v532_v38 = vsel %vm531_vm15, %v528_v55, %v530_v63  ;;  %v623_v63 = vrot.slane %v1064_v16, 7 }
  0xfc   :  { %v535_v0 = vsel %vm533_vm1, %v534_v62, %v532_v38  ;;  %v540_v33 = vsel %vm539_vm4, %v1067_v22, %v538_v26 }
  0xfd   :  { %v1088_v3 = vmin.f32 %v535_v0, 1.0  ;;  %v543_v42 = vsel %vm541_vm5, %v542_v34, %v540_v33 }
  0xfe   :  { %v575_v45 = vmul.f32 0.70710677, %v543_v42 }
  0xff   :  { %v544_v5 = vmul.f32 %v1088_v3, %v1088_v3 }
 0x100   :  { %v576_v46 = vmul.f32 %v575_v45, %v1088_v3 }
 0x101   :  { %v545_v1 = vmul.f32 %v544_v5, %v991_v56  ;;  %v546_v6 = vmul.f32 %v544_v5, %v997_v59  ;;  %v547_v8 = vmul.f32 %v544_v5, %v1002_v61  ;;  %v1096_v9 = vmul.f32 %v544_v5, %v1011_v2 }
 0x102   :  { %v577_v49 = vmul.f32 %v576_v46, %v994_v57  ;;  %v587_v52 = vmul.f32 %v576_v46, %v1000_v60 }
 0x103   :  { %v551_v10 = vrot.slane %v545_v1, 1  ;;  %v552_v11 = vrot.slane %v546_v6, 1  ;;  %v553_v12 = vrot.slane %v547_v8, 1  ;;  %v560_v13 = vrot.slane %v545_v1, 2 }
 0x104   :  { %v561_v17 = vrot.slane %v546_v6, 2  ;;  %v562_v18 = vrot.slane %v547_v8, 2  ;;  %v591_v36 = vrot.slane %v1096_v9, 1  ;;  %v592_v25 = vrot.slane %v1096_v9, 2 }
 0x105   :  { %v557_v19 = vadd.f32 %v551_v10, %v545_v1  ;;  %v558_v23 = vadd.f32 %v552_v11, %v546_v6  ;;  %v559_v24 = vadd.f32 %v553_v12, %v547_v8 }
 0x107   :  { %v566_v27 = vadd.f32 %v560_v13, %v557_v19  ;;  %v567_v28 = vadd.f32 %v561_v17, %v558_v23  ;;  %v568_v29 = vadd.f32 %v562_v18, %v559_v24 }
 0x109   :  { %v569_v30 = vadd.f32 1.0, %v566_v27  ;;  %v596_v15 = vsub.f32 %v566_v27, %v1096_v9  ;;  %v570_v31 = vadd.f32 1.0, %v567_v28  ;;  %v597_v32 = vsub.f32 %v567_v28, %v591_v36 }
 0x10a   :  { %v598_v21 = vsub.f32 %v568_v29, %v592_v25  ;;  %v571_v35 = vadd.f32 1.0, %v568_v29 }
 0x10b   :  { %836 = vrcp.f32 %v569_v30  ;;  %v599_v37 = vadd.f32 1.0, %v596_v15  ;;  %v600_v20 = vadd.f32 1.0, %v597_v32  ;;  %v646_v38 = vrot.slane %v570_v31, 7 }
 0x10c   :  { %838 = vrcp.f32 %v570_v31  ;;  %v601_v39 = vadd.f32 1.0, %v598_v21  ;;  %v648_v8 = vrot.slane %v571_v35, 6 }
 0x10d   :  { %840 = vrcp.f32 %v571_v35  ;;  %v605_v40 = vrot.slane %v600_v20, 7  ;;  %v647_v13 = vsel %vm323_vm2, %v646_v38, %v569_v30 }
 0x10e   :  { %v607_v41 = vrot.slane %v601_v39, 6  ;;  %v649_v17 = vsel %vm326_vm3, %v648_v8, %v647_v13 }
 0x10f   :  { %v606_v43 = vsel %vm323_vm2, %v605_v40, %v599_v37 }
 0x110   :  { %v608_v44 = vsel %vm326_vm3, %v607_v41, %v606_v43 }
 0x111   :  { %842 = vrcp.f32 %v608_v44 }
 0x118   :  { %v837_v47 = vpop.eup %836 }
 0x119   :  { %v839_v22 = vpop.eup %838 }
 0x11a   :  { %v841_v48 = vpop.eup %840  ;;  %v581_v51 = vrot.slane %v839_v22, 7 }
 0x11b   :  { %v583_v53 = vrot.slane %v841_v48, 6 }
 0x11c   :  { %v582_v54 = vsel %vm323_vm2, %v581_v51, %v837_v47 }
 0x11d   :  { %v584_v55 = vsel %vm326_vm3, %v583_v53, %v582_v54 }
 0x11e   :  { %v586_v58 = vmul.f32 %v584_v55, %v577_v49  ;;  %v588_v62 = vmul.f32 %v587_v52, %v584_v55  ;;  %v843_v0 = vpop.eup %842 }
 0x11f   :  { %v1115_v5 = vmul.f32 %v843_v0, %v1096_v9 }
 0x120   :  { %v617_v1 = vrot.slane %v586_v58, 5  ;;  %v620_v6 = vrot.slane %v588_v62, 2 }
 0x121   :  { %v1118_v10 = vadd.f32 1.0, %v1115_v5 }
 0x122   :  { %v628_v11 = vsel %vm477_vm10, %v1088_v3, %v617_v1  ;;  %v630_v12 = vsel %vm272_vm0, %v620_v6, %v623_v63 }
 0x123   :  { %v629_v16 = vsel %vm479_vm11, %v628_v11, %v620_v6  ;;  %844 = vlog2.f32 %v1118_v10  ;;  %v635_v14 = vmul.f32 %v1118_v10, %v1096_v9  ;;  %vm688_vm12 = vcmp.eq.f32.partialorder %v1118_v10, inf }
 0x124   :  { %633 = vst [vmem:[#allocation2 + $0x10] sm:$0xff] %v629_v16  ;;  %vm690_vm13 = vcmp.eq.f32.partialorder %v1118_v10, 0.0 }
 0x125   :  { %846 = vrsqrt.f32 %v635_v14  ;;  %vm638_vm6 = vcmp.eq.f32.partialorder %v635_v14, inf  ;;  %v641_v3 = vand.u32 2147483648, %v635_v14  ;;  %vm640_vm7 = vcmp.eq.f32.partialorder %v635_v14, 0.0 }
 0x126   :  { %848 = vrcp.f32 %v649_v17 }
 0x130   :  { %v845_v18 = vpop.eup %844 }
 0x131   :  { %v614_v19 = vmul.f32 0.6931472, %v845_v18 }
 0x132   :  { %v847_v23 = vpop.eup %846 }
 0x133   :  { %v615_v24 = vmul.f32 1.442695, %v614_v19  ;;  %v637_v36 = vmul.f32 %v847_v23, %v635_v14  ;;  %v849_v25 = vpop.eup %848  ;;  %v691_v23 = vand.u32 2147483648, %v1118_v10 }
 0x135   :  { %v626_v26 = vrot.slane %v615_v24, 4  ;;  %v639_v27 = vsel %vm638_vm6, %v635_v14, %v637_v36 }
 0x136   :  { %v642_v28 = vsel %vm640_vm7, %v641_v3, %v639_v27 }
 0x137   :  { %v631_v29 = vsel %vm482_vm14, %v630_v12, %v626_v26  ;;  %v652_v30 = vmul.f32 %v849_v25, %v642_v28 }
 0x138   :  { %634 = vst [vmem:[#allocation2 + $0x18] sm:$0x7f] %v631_v29 }
 0x139   :  { %v653_v9 = vmul.f32 0.70710677, %v652_v30 }
 0x13b   :  { %v654_v15 = vmul.f32 %v653_v9, %v653_v9 }
 0x13d   :  { %v658_v31 = vrot.slane %v654_v15, %v941_v4  ;;  %v663_v32 = vrot.slane %v654_v15, %v944_v7  ;;  %v669_v21 = vrot.slane %v654_v15, %v1026_v50  ;;  %v672_v41 = vmul.f32 %v654_v15, %v1118_v10 }
 0x13f   :  { %v659_v33 = vmul.f32 %v658_v31, %v991_v56  ;;  %v664_v34 = vmul.f32 %v663_v32, %v997_v59  ;;  %v670_v35 = vmul.f32 %v669_v21, %v1002_v61  ;;  %v673_v42 = vmul.f32 %v672_v41, %v1011_v2 }
 0x141   :  { %v665_v37 = vadd.f32 %v664_v34, %v659_v33 }
 0x143   :  { %v671_v20 = vadd.f32 %v670_v35, %v665_v37 }
 0x145   :  { %v674_v39 = vmul.f32 %v671_v20, %v671_v20 }
 0x147   :  { %v675_v40 = vmul.f32 2.0, %v674_v39 }
 0x149   :  { %850 = vrcp.f32 %v675_v40  ;;  %v772_v40 = vrot.slane %v1115_v5, 7 }
 0x156   :  { %v851_v4 = vpop.eup %850 }
 0x157   :  { %v677_v43 = vmul.f32 %v851_v4, %v673_v42 }
 0x159   :  { %852 = vrsqrt.f32 %v677_v43  ;;  %vm680_vm8 = vcmp.eq.f32.partialorder %v677_v43, inf  ;;  %v683_v50 = vand.u32 2147483648, %v677_v43  ;;  %vm682_vm9 = vcmp.eq.f32.partialorder %v677_v43, 0.0 }
 0x15a   :  { %854 = vrsqrt.f32 %v1118_v10 }
 0x166   :  { %v853_v7 = vpop.eup %852 }
 0x167   :  { %v679_v44 = vmul.f32 %v853_v7, %v677_v43  ;;  %v855_v62 = vpop.eup %854 }
 0x169   :  { %v681_v45 = vsel %vm680_vm8, %v677_v43, %v679_v44 }
 0x16a   :  { %v684_v46 = vsel %vm682_vm9, %v683_v50, %v681_v45 }
 0x16b   :  { %v1139_v47 = vmin.f32 %v684_v46, 1.0 }
 0x16d   :  { %v693_v22 = vmul.f32 %v1139_v47, %v1139_v47 }
 0x16f   :  { %v694_v48 = vmul.f32 %v693_v22, %v991_v56  ;;  %v695_v49 = vmul.f32 %v693_v22, %v997_v59  ;;  %v696_v51 = vmul.f32 %v693_v22, %v1002_v61  ;;  %v738_v52 = vmul.f32 %v693_v22, %v1011_v2 }
 0x170   :  { %v687_v56 = vmul.f32 %v855_v62, %v1118_v10 }
 0x171   :  { %v700_v53 = vrot.slane %v694_v48, 1  ;;  %v701_v54 = vrot.slane %v695_v49, 1  ;;  %v702_v55 = vrot.slane %v696_v51, 1  ;;  %v709_v58 = vrot.slane %v694_v48, 2 }
 0x172   :  { %v710_v63 = vrot.slane %v695_v49, 2  ;;  %v711_v38 = vrot.slane %v696_v51, 2  ;;  %v740_v8 = vrot.slane %v738_v52, 1  ;;  %v741_v11 = vrot.slane %v738_v52, 2 }
 0x173   :  { %v706_v0 = vadd.f32 %v700_v53, %v694_v48  ;;  %v707_v1 = vadd.f32 %v701_v54, %v695_v49  ;;  %v708_v6 = vadd.f32 %v702_v55, %v696_v51  ;;  %v689_v19 = vsel %vm688_vm12, %v1118_v10, %v687_v56 }
 0x174   :  { %v692_v27 = vsel %vm690_vm13, %v691_v23, %v689_v19 }
 0x175   :  { %v715_v12 = vadd.f32 %v709_v58, %v706_v0  ;;  %v716_v59 = vadd.f32 %v710_v63, %v707_v1  ;;  %v717_v13 = vadd.f32 %v711_v38, %v708_v6  ;;  %v724_v30 = vmul.f32 0.70710677, %v692_v27 }
 0x177   :  { %v718_v61 = vadd.f32 1.0, %v715_v12  ;;  %v719_v2 = vadd.f32 1.0, %v716_v59  ;;  %v720_v16 = vadd.f32 1.0, %v717_v13  ;;  %v745_v14 = vsub.f32 %v715_v12, %v738_v52 }
 0x178   :  { %v746_v17 = vsub.f32 %v716_v59, %v740_v8  ;;  %v747_v18 = vsub.f32 %v717_v13, %v741_v11  ;;  %v725_v9 = vmul.f32 %v724_v30, %v1139_v47 }
 0x179   :  { %856 = vrcp.f32 %v718_v61  ;;  %v748_v3 = vadd.f32 1.0, %v745_v14 }
 0x17a   :  { %858 = vrcp.f32 %v719_v2  ;;  %v749_v24 = vadd.f32 1.0, %v746_v17  ;;  %v750_v36 = vadd.f32 1.0, %v747_v18  ;;  %v726_v32 = vmul.f32 %v725_v9, %v994_v57 }
 0x17b   :  { %860 = vrcp.f32 %v720_v16  ;;  %v736_v33 = vmul.f32 %v725_v9, %v1000_v60 }
 0x17c   :  { %v754_v25 = vrot.slane %v749_v24, 7  ;;  %v756_v26 = vrot.slane %v750_v36, 6 }
 0x17e   :  { %v755_v28 = vsel %vm323_vm2, %v754_v25, %v748_v3 }
 0x17f   :  { %v757_v29 = vsel %vm326_vm3, %v756_v26, %v755_v28 }
 0x180   :  { %862 = vrcp.f32 %v757_v29 }
 0x186   :  { %v857_v15 = vpop.eup %856 }
 0x187   :  { %v859_v31 = vpop.eup %858 }
 0x188   :  { %v861_v10 = vpop.eup %860  ;;  %v730_v21 = vrot.slane %v859_v31, 7 }
 0x189   :  { %v732_v34 = vrot.slane %v861_v10, 6 }
 0x18a   :  { %v731_v35 = vsel %vm323_vm2, %v730_v21, %v857_v15 }
 0x18b   :  { %v733_v37 = vsel %vm326_vm3, %v732_v34, %v731_v35 }
 0x18c   :  { %v735_v20 = vmul.f32 %v733_v37, %v726_v32  ;;  %v737_v39 = vmul.f32 %v736_v33, %v733_v37 }
 0x18d   :  { %v863_v41 = vpop.eup %862 }
 0x18e   :  { %v760_v42 = vmul.f32 %v863_v41, %v738_v52  ;;  %v766_v4 = vrot.slane %v735_v20, 5  ;;  %v769_v43 = vrot.slane %v737_v39, 2 }
 0x190   :  { %v761_v7 = vadd.f32 1.0, %v760_v42  ;;  %v777_v57 = vsel %vm477_vm10, %v1139_v47, %v766_v4  ;;  %v779_v50 = vsel %vm272_vm0, %v769_v43, %v772_v40 }
 0x191   :  { %v778_v60 = vsel %vm479_vm11, %v777_v57, %v769_v43 }
 0x192   :  { %864 = vlog2.f32 %v761_v7  ;;  %782 = vst [vmem:[#allocation2 + $0x20] sm:$0xff] %v778_v60 }
 0x19f   :  { %v865_v44 = vpop.eup %864 }
 0x1a0   :  { %v763_v45 = vmul.f32 0.6931472, %v865_v44 }
 0x1a2   :  { %v764_v46 = vmul.f32 1.442695, %v763_v45 }
 0x1a4   :  { %v775_v5 = vrot.slane %v764_v46, 4 }
 0x1a6   :  { %v780_v22 = vsel %vm482_vm14, %v779_v50, %v775_v5 }
 0x1a7   :  { %783 = vst [vmem:[#allocation2 + $0x28] sm:$0x7f] %v780_v22 }
 0x1a8   :  { %877 = shalt.err (!%p874_p4)
}
 0x1a9   :  { %s890_s19 = smov 128   ;;  %s891_s20 = smov 8  }
 0x1aa   :  { %795 = dma.vmem_to_hbm [thread:$0]  %s790_s17, 768, %s1175_s7, [#allocation3], %s890_s19, %s890_s19, %s891_s20  }
 0x1ab   :  { %886 = dma.done.wait [#allocation3], 768  }
 0x1ac   :  { %887 = vsyncadd [#allocation3], 4294966528 }
 0x1ad   :  { %799 = vsyncpa [#allocation3], 1 }

</bundles_post_ra>
